<compile_context>
chip_gen: v7x
topology: tpu7x:2x2x1
jax: 0.10.0
libtpu: 0.0.40
codegen_flags: <defaults>
</compile_context>

<pallas_src>
import functools

import jax
import jax.numpy as jnp
from jax.experimental import pallas as pl
from jax.experimental.pallas import tpu as pltpu


def _transformer_layer_kernel(
    x_ref, attn_in_ref,
    wqt_ref, wk_ref, wv_ref, wproj_ref,
    ln1_g_ref, ln1_b_ref,
    wff1_ref, bff1_ref, wff2_ref, bff2_ref,
    ln2_g_ref, ln2_b_ref,
    out_ref, attn_out_ref,
    *, n_head, d_head, batch, seq, eps):
  f32 = jnp.float32
  x = x_ref[...]                                     # (B*P, D)
  bp, d_model = x.shape
  hd = n_head * d_head

  # ---------------- MHSA ----------------
  # Full-width K / V projections (one matmul each).
  k = jnp.dot(x, wk_ref[...], preferred_element_type=f32)       # (BP, HD)
  v = jnp.dot(x, wv_ref[...], preferred_element_type=f32)       # (BP, HD)
  k3 = k.reshape(batch, seq, hd)
  v3 = v.reshape(batch, seq, hd)

  ctx_parts = []
  for g in range(n_head):                      # static, H = 4
    # wqt[g] already contains wtalk[g, :]/sqrt(d_head) folded into Wq, so the
    # full-width HD contraction against K realizes
    #   sum_h wtalk[g,h] * (q_h / scale) @ k_h^T     (talking-heads 1x1 conv).
    qt_g = jnp.dot(x, wqt_ref[g], preferred_element_type=f32)   # (BP, HD)
    logits = jnp.einsum('bpd,bqd->bpq',
                        qt_g.reshape(batch, seq, hd), k3,
                        preferred_element_type=f32)             # (B, P, P)
    logits = logits + attn_in_ref[g]          # RealFormer pre-softmax residual
    m = jnp.max(logits, axis=-1, keepdims=True)
    e = jnp.exp(logits - m)
    attn_g = e / jnp.sum(e, axis=-1, keepdims=True)             # softmax, p=0
    attn_out_ref[g] = attn_g
    v_g = v3[:, :, g * d_head:(g + 1) * d_head]                 # (B, P, dh)
    ctx_g = jnp.einsum('bpq,bqd->bpd', attn_g, v_g,
                       preferred_element_type=f32)              # (B, P, dh)
    ctx_parts.append(ctx_g.reshape(bp, d_head))

  ctx = jnp.concatenate(ctx_parts, axis=-1)                     # (BP, HD)
  x_sa = jnp.dot(ctx, wproj_ref[...], preferred_element_type=f32)   # (BP, D)

  # ---------------- residual + LayerNorm 1 ----------------
  h1 = x + x_sa
  mu = jnp.mean(h1, axis=-1, keepdims=True)
  var = jnp.mean(jnp.square(h1 - mu), axis=-1, keepdims=True)
  h1 = (h1 - mu) * jax.lax.rsqrt(var + eps) * ln1_g_ref[...] + ln1_b_ref[...]

  # ---------------- GLU feed-forward (relu gate) ----------------
  ff1 = jnp.dot(h1, wff1_ref[...], preferred_element_type=f32) + bff1_ref[...]
  dim_f = wff2_ref.shape[0]
  a = ff1[:, :dim_f]
  gate = ff1[:, dim_f:]
  gated = a * jnp.maximum(gate, 0.0)
  ffo = jnp.dot(gated, wff2_ref[...], preferred_element_type=f32) + bff2_ref[...]

  # ---------------- residual + LayerNorm 2 ----------------
  h2 = h1 + ffo
  mu2 = jnp.mean(h2, axis=-1, keepdims=True)
  var2 = jnp.mean(jnp.square(h2 - mu2), axis=-1, keepdims=True)
  out_ref[...] = (h2 - mu2) * jax.lax.rsqrt(var2 + eps) * ln2_g_ref[...] + ln2_b_ref[...]


def transformer_layer(x, attn_in, params, *, n_head, d_head, eps=1e-5):
  B, P, D = x.shape
  H = n_head
  HD = H * d_head
  d_mid = params['wff1'].shape[1]
  dim_f = d_mid // 2
  scale = float(d_head) ** 0.5     # torch.tensor(d_fix_qk) ** 0.5

  # Fold 1/sqrt(d_head) and the talking-heads 1x1-conv weights into the Q
  # projection: wqt[g, :, h*dh:(h+1)*dh] = wtalk[g, h] / scale * Wq[:, h*dh:(h+1)*dh]
  wq_heads = params['wq'].reshape(D, H, d_head)
  wqt = jnp.einsum('gh,dhe->gdhe', params['wtalk'] / scale, wq_heads)
  wqt = wqt.reshape(H, D, HD)

  # Batch folded into the block; attention maps carried head-major so the
  # kernel indexes them along the leading axis.
  x2 = x.reshape(B * P, D)
  attn_in_t = jnp.transpose(attn_in, (1, 0, 2, 3))   # (H, B, P, P)

  kernel = functools.partial(_transformer_layer_kernel, n_head=H, d_head=d_head,
                             batch=B, seq=P, eps=eps)

  def full(shape):
    return pl.BlockSpec(shape, lambda i, n=len(shape): (0,) * n)

  grid_spec = pltpu.PrefetchScalarGridSpec(
      num_scalar_prefetch=0,
      grid=(1,),                                       # single step: batch folded
      in_specs=[
          full((B * P, D)),                            # x (flattened over batch)
          full((H, B, P, P)),                          # RealFormer attn residual
          full((H, D, HD)),                            # talking-heads-folded W_q
          full((D, HD)),                               # W_k
          full((D, HD)),                               # W_v
          full((HD, D)),                               # W_proj_v
          full((1, D)), full((1, D)),                  # LN1 gamma / beta
          full((D, d_mid)), full((1, d_mid)),          # FF linear1 weight / bias
          full((dim_f, D)), full((1, D)),              # FF linear2 weight / bias
          full((1, D)), full((1, D)),                  # LN2 gamma / beta
      ],
      out_specs=[
          full((B * P, D)),
          full((H, B, P, P)),
      ],
  )

  flops = 2 * (H * (B * P) * D * HD       # talking-folded Q projections
               + 2 * (B * P) * D * HD     # K, V projections
               + H * B * P * HD * P       # logits (full-width contraction)
               + H * B * P * P * d_head   # attn @ V
               + (B * P) * HD * D         # output projection
               + (B * P) * D * d_mid      # FF1
               + (B * P) * dim_f * D)     # FF2
  bytes_accessed = 4 * (2 * x.size + 2 * attn_in.size + wqt.size
                        + 2 * D * HD + HD * D + D * d_mid + dim_f * D
                        + d_mid + 5 * D)
  cost = pl.CostEstimate(flops=int(flops),
                         transcendentals=int(H * B * P * P),
                         bytes_accessed=int(bytes_accessed))

  # TODO(synk): for large P, switch to a flash-style KV-tiled grid ("arbitrary"
  # kv axis) instead of materializing (H,P,P) attention blocks in VMEM (v7x has
  # only 64 MiB); at P=8 the blocks are tiny so they are kept resident.
  out2, attn_t = pl.pallas_call(
      kernel,
      out_shape=[jax.ShapeDtypeStruct((B * P, D), jnp.float32),
                 jax.ShapeDtypeStruct((H, B, P, P), jnp.float32)],
      grid_spec=grid_spec,
      compiler_params=pltpu.CompilerParams(dimension_semantics=("arbitrary",)),
      cost_estimate=cost,
  )(x2, attn_in_t,
    wqt, params['wk'], params['wv'], params['wproj'],
    params['ln1_g'], params['ln1_b'],
    params['wff1'], params['bff1'], params['wff2'], params['bff2'],
    params['ln2_g'], params['ln2_b'])

  return out2.reshape(B, P, D), jnp.transpose(attn_t, (1, 0, 2, 3))


def reference(x, attn_in, p, *, n_head, d_head, eps=1e-5):
  """Pure-JAX mirror of the PyTorch forward (dropout p=0)."""
  B, P, D = x.shape
  H = n_head
  scale = float(d_head) ** 0.5

  def heads(w):
    return (x @ w).reshape(B, P, H, d_head).transpose(0, 2, 1, 3)

  q = heads(p['wq']) / scale
  k = heads(p['wk'])
  v = heads(p['wv'])
  logits = jnp.einsum('bhpd,bhqd->bhpq', q, k)
  mixed = jnp.einsum('gh,bhpq->bgpq', p['wtalk'], logits) + attn_in
  attn = jax.nn.softmax(mixed, axis=-1)
  ctx = jnp.einsum('bhpq,bhqd->bhpd', attn, v)
  ctx = ctx.transpose(0, 2, 1, 3).reshape(B, P, H * d_head)
  x_sa = ctx @ p['wproj']

  def ln(z, g, b):
    mu = z.mean(-1, keepdims=True)
    var = ((z - mu) ** 2).mean(-1, keepdims=True)
    return (z - mu) * jax.lax.rsqrt(var + eps) * g + b

  h1 = ln(x + x_sa, p['ln1_g'], p['ln1_b'])
  dim_f = p['wff2'].shape[0]
  ff1 = h1 @ p['wff1'] + p['bff1']
  a, gate = ff1[..., :dim_f], ff1[..., dim_f:]
  ffo = (a * jax.nn.relu(gate)) @ p['wff2'] + p['bff2']
  return ln(h1 + ffo, p['ln2_g'], p['ln2_b']), attn


if __name__ == "__main__":
  B, P, D = 2, 8, 64          # batch, seq, d_model
  H, d_head = 4, 16           # n_head_qk = n_head_v = 4, d_fix_qk = d_fix_v = 16
  d_mid = 128                 # GLU feed-forward width -> dim_f = 64
  dim_f = d_mid // 2

  key = jax.random.PRNGKey(0)
  ks = jax.random.split(key, 16)

  def init(k, shape, s=0.1):
    return jax.random.normal(k, shape, jnp.float32) * s

  params = dict(
      wq=init(ks[0], (D, H * d_head)),
      wk=init(ks[1], (D, H * d_head)),
      wv=init(ks[2], (D, H * d_head)),
      wtalk=init(ks[3], (H, H), 0.5) + jnp.eye(H, dtype=jnp.float32),  # Conv2d 1x1
      wproj=init(ks[4], (H * d_head, D)),
      ln1_g=jnp.ones((1, D), jnp.float32),
      ln1_b=jnp.zeros((1, D), jnp.float32),
      wff1=init(ks[5], (D, d_mid)),          # GLU linear1 (fused halves)
      bff1=init(ks[6], (1, d_mid), 0.02),
      wff2=init(ks[7], (dim_f, D)),          # GLU linear2
      bff2=init(ks[8], (1, D), 0.02),
      ln2_g=jnp.ones((1, D), jnp.float32),
      ln2_b=jnp.zeros((1, D), jnp.float32),
  )

  x = jax.random.normal(ks[9], (B, P, D), jnp.float32)
  # RealFormer residual attention from a (pretend) previous layer.
  attn_in = init(ks[10], (B, H, P, P), 0.1)

  out, attn = transformer_layer(x, attn_in, params, n_head=H, d_head=d_head)
  jax.block_until_ready((out, attn))

  ref_out, ref_attn = reference(x, attn_in, params, n_head=H, d_head=d_head)
  assert jnp.allclose(out, ref_out, atol=5e-3, rtol=5e-3), \
      float(jnp.max(jnp.abs(out - ref_out)))
  assert jnp.allclose(attn, ref_attn, atol=5e-3, rtol=5e-3), \
      float(jnp.max(jnp.abs(attn - ref_attn)))

  # TODO(synk): dropout layers are identities (p=0.0 in this config); no RNG path emitted.
  print("KERNEL_OK")
</pallas_src>

<mosaic_0001>
module attributes {stable_mosaic.version = 11 : i64} {
  func.func @_transformer_layer_kernel(%arg0: i32, %arg1: memref<16x64xf32, #tpu.memory_space<vmem>>, %arg2: memref<4x2x8x8xf32, #tpu.memory_space<vmem>>, %arg3: memref<4x64x64xf32, #tpu.memory_space<vmem>>, %arg4: memref<64x64xf32, #tpu.memory_space<vmem>>, %arg5: memref<64x64xf32, #tpu.memory_space<vmem>>, %arg6: memref<64x64xf32, #tpu.memory_space<vmem>>, %arg7: memref<1x64xf32, #tpu.memory_space<vmem>>, %arg8: memref<1x64xf32, #tpu.memory_space<vmem>>, %arg9: memref<64x128xf32, #tpu.memory_space<vmem>>, %arg10: memref<1x128xf32, #tpu.memory_space<vmem>>, %arg11: memref<64x64xf32, #tpu.memory_space<vmem>>, %arg12: memref<1x64xf32, #tpu.memory_space<vmem>>, %arg13: memref<1x64xf32, #tpu.memory_space<vmem>>, %arg14: memref<1x64xf32, #tpu.memory_space<vmem>>, %arg15: memref<16x64xf32, #tpu.memory_space<vmem>>, %arg16: memref<4x2x8x8xf32, #tpu.memory_space<vmem>>) attributes {dimension_semantics = [#tpu.dimension_semantics<arbitrary>], iteration_bounds = array<i64: 1>, scalar_prefetch = 0 : i64, scratch_operands = 0 : i64, tpu.core_type = #tpu.core_type<tc>, window_params = [{pipeline_mode = #tpu.pipeline_mode<synchronous>, transform_indices = @transform_0, window_bounds = array<i64: 16, 64>}, {pipeline_mode = #tpu.pipeline_mode<synchronous>, transform_indices = @transform_1, window_bounds = array<i64: 4, 2, 8, 8>}, {pipeline_mode = #tpu.pipeline_mode<synchronous>, transform_indices = @transform_2, window_bounds = array<i64: 4, 64, 64>}, {pipeline_mode = #tpu.pipeline_mode<synchronous>, transform_indices = @transform_3, window_bounds = array<i64: 64, 64>}, {pipeline_mode = #tpu.pipeline_mode<synchronous>, transform_indices = @transform_4, window_bounds = array<i64: 64, 64>}, {pipeline_mode = #tpu.pipeline_mode<synchronous>, transform_indices = @transform_5, window_bounds = array<i64: 64, 64>}, {pipeline_mode = #tpu.pipeline_mode<synchronous>, transform_indices = @transform_6, window_bounds = array<i64: 1, 64>}, {pipeline_mode = #tpu.pipeline_mode<synchronous>, transform_indices = @transform_7, window_bounds = array<i64: 1, 64>}, {pipeline_mode = #tpu.pipeline_mode<synchronous>, transform_indices = @transform_8, window_bounds = array<i64: 64, 128>}, {pipeline_mode = #tpu.pipeline_mode<synchronous>, transform_indices = @transform_9, window_bounds = array<i64: 1, 128>}, {pipeline_mode = #tpu.pipeline_mode<synchronous>, transform_indices = @transform_10, window_bounds = array<i64: 64, 64>}, {pipeline_mode = #tpu.pipeline_mode<synchronous>, transform_indices = @transform_11, window_bounds = array<i64: 1, 64>}, {pipeline_mode = #tpu.pipeline_mode<synchronous>, transform_indices = @transform_12, window_bounds = array<i64: 1, 64>}, {pipeline_mode = #tpu.pipeline_mode<synchronous>, transform_indices = @transform_13, window_bounds = array<i64: 1, 64>}, {pipeline_mode = #tpu.pipeline_mode<synchronous>, transform_indices = @transform_14, window_bounds = array<i64: 16, 64>}, {pipeline_mode = #tpu.pipeline_mode<synchronous>, transform_indices = @transform_15, window_bounds = array<i64: 4, 2, 8, 8>}]} {
    %c0 = arith.constant 0 : index
    %c0_0 = arith.constant 0 : index
    %0 = vector.load %arg1[%c0, %c0_0] : memref<16x64xf32, #tpu.memory_space<vmem>>, vector<16x64xf32>
    %c0_1 = arith.constant 0 : index
    %c0_2 = arith.constant 0 : index
    %1 = vector.load %arg4[%c0_1, %c0_2] : memref<64x64xf32, #tpu.memory_space<vmem>>, vector<64x64xf32>
    %cst = arith.constant dense<0.000000e+00> : vector<16x64xf32>
    %2 = tpu.matmul %0, %1, %cst {dimension_numbers = #tpu.dot_dimension_numbers<[1], [0], [0], [1], [0, 0, 1, 1], [], []>} : vector<16x64xf32>, vector<64x64xf32>, vector<16x64xf32> -> vector<16x64xf32>
    %c0_3 = arith.constant 0 : index
    %c0_4 = arith.constant 0 : index
    %3 = vector.load %arg5[%c0_3, %c0_4] : memref<64x64xf32, #tpu.memory_space<vmem>>, vector<64x64xf32>
    %cst_5 = arith.constant dense<0.000000e+00> : vector<16x64xf32>
    %4 = tpu.matmul %0, %3, %cst_5 {dimension_numbers = #tpu.dot_dimension_numbers<[1], [0], [0], [1], [0, 0, 1, 1], [], []>} : vector<16x64xf32>, vector<64x64xf32>, vector<16x64xf32> -> vector<16x64xf32>
    %5 = vector.shape_cast %2 : vector<16x64xf32> to vector<2x8x64xf32>
    %6 = vector.shape_cast %4 : vector<16x64xf32> to vector<2x8x64xf32>
    %c0_6 = arith.constant 0 : index
    %c0_7 = arith.constant 0 : index
    %c0_8 = arith.constant 0 : index
    %7 = vector.load %arg3[%c0_6, %c0_7, %c0_8] : memref<4x64x64xf32, #tpu.memory_space<vmem>>, vector<1x64x64xf32>
    %8 = vector.shape_cast %7 : vector<1x64x64xf32> to vector<64x64xf32>
    %cst_9 = arith.constant dense<0.000000e+00> : vector<16x64xf32>
    %9 = tpu.matmul %0, %8, %cst_9 {dimension_numbers = #tpu.dot_dimension_numbers<[1], [0], [0], [1], [0, 0, 1, 1], [], []>} : vector<16x64xf32>, vector<64x64xf32>, vector<16x64xf32> -> vector<16x64xf32>
    %10 = vector.shape_cast %9 : vector<16x64xf32> to vector<2x8x64xf32>
    "tpu.trace_start"() <{level = 10 : i32, message = "bpd,bqd->bpq"}> : () -> ()
    %cst_10 = arith.constant dense<0.000000e+00> : vector<2x8x8xf32>
    %11 = tpu.matmul %10, %5, %cst_10 {dimension_numbers = #tpu.dot_dimension_numbers<[2], [2], [1], [1], [0, 0, 0, 1, 1, 1], [0], [0]>} : vector<2x8x64xf32>, vector<2x8x64xf32>, vector<2x8x8xf32> -> vector<2x8x8xf32>
    "tpu.trace_stop"() : () -> ()
    %c0_11 = arith.constant 0 : index
    %c0_12 = arith.constant 0 : index
    %c0_13 = arith.constant 0 : index
    %c0_14 = arith.constant 0 : index
    %12 = vector.load %arg2[%c0_11, %c0_12, %c0_13, %c0_14] : memref<4x2x8x8xf32, #tpu.memory_space<vmem>>, vector<1x2x8x8xf32>
    %13 = vector.shape_cast %12 : vector<1x2x8x8xf32> to vector<2x8x8xf32>
    %14 = arith.addf %11, %13 : vector<2x8x8xf32>
    %cst_15 = arith.constant dense<0xFF800000> : vector<2x8xf32>
    %15 = vector.multi_reduction <maximumf>, %14, %cst_15 [2] : vector<2x8x8xf32> to vector<2x8xf32>
    %16 = vector.shape_cast %15 : vector<2x8xf32> to vector<2x8x1xf32>
    %17 = vector.broadcast %16 : vector<2x8x1xf32> to vector<2x8x8xf32>
    %18 = arith.subf %14, %17 : vector<2x8x8xf32>
    %19 = math.exp %18 : vector<2x8x8xf32>
    %cst_16 = arith.constant dense<0.000000e+00> : vector<2x8xf32>
    %20 = vector.multi_reduction <add>, %19, %cst_16 [2] : vector<2x8x8xf32> to vector<2x8xf32>
    %21 = vector.shape_cast %20 : vector<2x8xf32> to vector<2x8x1xf32>
    %22 = vector.broadcast %21 : vector<2x8x1xf32> to vector<2x8x8xf32>
    %23 = arith.divf %19, %22 : vector<2x8x8xf32>
    %c0_17 = arith.constant 0 : index
    %c0_18 = arith.constant 0 : index
    %c0_19 = arith.constant 0 : index
    %c0_20 = arith.constant 0 : index
    %24 = vector.load %arg16[%c0_17, %c0_18, %c0_19, %c0_20] : memref<4x2x8x8xf32, #tpu.memory_space<vmem>>, vector<1x2x8x8xf32>
    %25 = vector.shape_cast %24 : vector<1x2x8x8xf32> to vector<2x8x8xf32>
    %26 = vector.shape_cast %23 : vector<2x8x8xf32> to vector<1x2x8x8xf32>
    tpu.vector_store %arg16[%c0_17, %c0_18, %c0_19, %c0_20], %26 {strides = array<i32>} : memref<4x2x8x8xf32, #tpu.memory_space<vmem>>, vector<1x2x8x8xf32>,
    %27 = vector.extract_strided_slice %6 {offsets = [0, 0, 0], sizes = [2, 8, 16], strides = [1, 1, 1]} : vector<2x8x64xf32> to vector<2x8x16xf32>
    "tpu.trace_start"() <{level = 10 : i32, message = "bpq,bqd->bpd"}> : () -> ()
    %cst_21 = arith.constant dense<0.000000e+00> : vector<2x8x16xf32>
    %28 = tpu.matmul %23, %27, %cst_21 {dimension_numbers = #tpu.dot_dimension_numbers<[2], [1], [1], [2], [0, 0, 0, 1, 1, 2], [0], [0]>} : vector<2x8x8xf32>, vector<2x8x16xf32>, vector<2x8x16xf32> -> vector<2x8x16xf32>
    "tpu.trace_stop"() : () -> ()
    %29 = vector.shape_cast %28 : vector<2x8x16xf32> to vector<16x16xf32>
    %c1 = arith.constant 1 : index
    %c0_22 = arith.constant 0 : index
    %c0_23 = arith.constant 0 : index
    %30 = vector.load %arg3[%c1, %c0_22, %c0_23] : memref<4x64x64xf32, #tpu.memory_space<vmem>>, vector<1x64x64xf32>
    %31 = vector.shape_cast %30 : vector<1x64x64xf32> to vector<64x64xf32>
    %cst_24 = arith.constant dense<0.000000e+00> : vector<16x64xf32>
    %32 = tpu.matmul %0, %31, %cst_24 {dimension_numbers = #tpu.dot_dimension_numbers<[1], [0], [0], [1], [0, 0, 1, 1], [], []>} : vector<16x64xf32>, vector<64x64xf32>, vector<16x64xf32> -> vector<16x64xf32>
    %33 = vector.shape_cast %32 : vector<16x64xf32> to vector<2x8x64xf32>
    "tpu.trace_start"() <{level = 10 : i32, message = "bpd,bqd->bpq"}> : () -> ()
    %cst_25 = arith.constant dense<0.000000e+00> : vector<2x8x8xf32>
    %34 = tpu.matmul %33, %5, %cst_25 {dimension_numbers = #tpu.dot_dimension_numbers<[2], [2], [1], [1], [0, 0, 0, 1, 1, 1], [0], [0]>} : vector<2x8x64xf32>, vector<2x8x64xf32>, vector<2x8x8xf32> -> vector<2x8x8xf32>
    "tpu.trace_stop"() : () -> ()
    %c1_26 = arith.constant 1 : index
    %c0_27 = arith.constant 0 : index
    %c0_28 = arith.constant 0 : index
    %c0_29 = arith.constant 0 : index
    %35 = vector.load %arg2[%c1_26, %c0_27, %c0_28, %c0_29] : memref<4x2x8x8xf32, #tpu.memory_space<vmem>>, vector<1x2x8x8xf32>
    %36 = vector.shape_cast %35 : vector<1x2x8x8xf32> to vector<2x8x8xf32>
    %37 = arith.addf %34, %36 : vector<2x8x8xf32>
    %cst_30 = arith.constant dense<0xFF800000> : vector<2x8xf32>
    %38 = vector.multi_reduction <maximumf>, %37, %cst_30 [2] : vector<2x8x8xf32> to vector<2x8xf32>
    %39 = vector.shape_cast %38 : vector<2x8xf32> to vector<2x8x1xf32>
    %40 = vector.broadcast %39 : vector<2x8x1xf32> to vector<2x8x8xf32>
    %41 = arith.subf %37, %40 : vector<2x8x8xf32>
    %42 = math.exp %41 : vector<2x8x8xf32>
    %cst_31 = arith.constant dense<0.000000e+00> : vector<2x8xf32>
    %43 = vector.multi_reduction <add>, %42, %cst_31 [2] : vector<2x8x8xf32> to vector<2x8xf32>
    %44 = vector.shape_cast %43 : vector<2x8xf32> to vector<2x8x1xf32>
    %45 = vector.broadcast %44 : vector<2x8x1xf32> to vector<2x8x8xf32>
    %46 = arith.divf %42, %45 : vector<2x8x8xf32>
    %c1_32 = arith.constant 1 : index
    %c0_33 = arith.constant 0 : index
    %c0_34 = arith.constant 0 : index
    %c0_35 = arith.constant 0 : index
    %47 = vector.load %arg16[%c1_32, %c0_33, %c0_34, %c0_35] : memref<4x2x8x8xf32, #tpu.memory_space<vmem>>, vector<1x2x8x8xf32>
    %48 = vector.shape_cast %47 : vector<1x2x8x8xf32> to vector<2x8x8xf32>
    %49 = vector.shape_cast %46 : vector<2x8x8xf32> to vector<1x2x8x8xf32>
    tpu.vector_store %arg16[%c1_32, %c0_33, %c0_34, %c0_35], %49 {strides = array<i32>} : memref<4x2x8x8xf32, #tpu.memory_space<vmem>>, vector<1x2x8x8xf32>,
    %50 = vector.extract_strided_slice %6 {offsets = [0, 0, 16], sizes = [2, 8, 16], strides = [1, 1, 1]} : vector<2x8x64xf32> to vector<2x8x16xf32>
    "tpu.trace_start"() <{level = 10 : i32, message = "bpq,bqd->bpd"}> : () -> ()
    %cst_36 = arith.constant dense<0.000000e+00> : vector<2x8x16xf32>
    %51 = tpu.matmul %46, %50, %cst_36 {dimension_numbers = #tpu.dot_dimension_numbers<[2], [1], [1], [2], [0, 0, 0, 1, 1, 2], [0], [0]>} : vector<2x8x8xf32>, vector<2x8x16xf32>, vector<2x8x16xf32> -> vector<2x8x16xf32>
    "tpu.trace_stop"() : () -> ()
    %52 = vector.shape_cast %51 : vector<2x8x16xf32> to vector<16x16xf32>
    %c2 = arith.constant 2 : index
    %c0_37 = arith.constant 0 : index
    %c0_38 = arith.constant 0 : index
    %53 = vector.load %arg3[%c2, %c0_37, %c0_38] : memref<4x64x64xf32, #tpu.memory_space<vmem>>, vector<1x64x64xf32>
    %54 = vector.shape_cast %53 : vector<1x64x64xf32> to vector<64x64xf32>
    %cst_39 = arith.constant dense<0.000000e+00> : vector<16x64xf32>
    %55 = tpu.matmul %0, %54, %cst_39 {dimension_numbers = #tpu.dot_dimension_numbers<[1], [0], [0], [1], [0, 0, 1, 1], [], []>} : vector<16x64xf32>, vector<64x64xf32>, vector<16x64xf32> -> vector<16x64xf32>
    %56 = vector.shape_cast %55 : vector<16x64xf32> to vector<2x8x64xf32>
    "tpu.trace_start"() <{level = 10 : i32, message = "bpd,bqd->bpq"}> : () -> ()
    %cst_40 = arith.constant dense<0.000000e+00> : vector<2x8x8xf32>
    %57 = tpu.matmul %56, %5, %cst_40 {dimension_numbers = #tpu.dot_dimension_numbers<[2], [2], [1], [1], [0, 0, 0, 1, 1, 1], [0], [0]>} : vector<2x8x64xf32>, vector<2x8x64xf32>, vector<2x8x8xf32> -> vector<2x8x8xf32>
    "tpu.trace_stop"() : () -> ()
    %c2_41 = arith.constant 2 : index
    %c0_42 = arith.constant 0 : index
    %c0_43 = arith.constant 0 : index
    %c0_44 = arith.constant 0 : index
    %58 = vector.load %arg2[%c2_41, %c0_42, %c0_43, %c0_44] : memref<4x2x8x8xf32, #tpu.memory_space<vmem>>, vector<1x2x8x8xf32>
    %59 = vector.shape_cast %58 : vector<1x2x8x8xf32> to vector<2x8x8xf32>
    %60 = arith.addf %57, %59 : vector<2x8x8xf32>
    %cst_45 = arith.constant dense<0xFF800000> : vector<2x8xf32>
    %61 = vector.multi_reduction <maximumf>, %60, %cst_45 [2] : vector<2x8x8xf32> to vector<2x8xf32>
    %62 = vector.shape_cast %61 : vector<2x8xf32> to vector<2x8x1xf32>
    %63 = vector.broadcast %62 : vector<2x8x1xf32> to vector<2x8x8xf32>
    %64 = arith.subf %60, %63 : vector<2x8x8xf32>
    %65 = math.exp %64 : vector<2x8x8xf32>
    %cst_46 = arith.constant dense<0.000000e+00> : vector<2x8xf32>
    %66 = vector.multi_reduction <add>, %65, %cst_46 [2] : vector<2x8x8xf32> to vector<2x8xf32>
    %67 = vector.shape_cast %66 : vector<2x8xf32> to vector<2x8x1xf32>
    %68 = vector.broadcast %67 : vector<2x8x1xf32> to vector<2x8x8xf32>
    %69 = arith.divf %65, %68 : vector<2x8x8xf32>
    %c2_47 = arith.constant 2 : index
    %c0_48 = arith.constant 0 : index
    %c0_49 = arith.constant 0 : index
    %c0_50 = arith.constant 0 : index
    %70 = vector.load %arg16[%c2_47, %c0_48, %c0_49, %c0_50] : memref<4x2x8x8xf32, #tpu.memory_space<vmem>>, vector<1x2x8x8xf32>
    %71 = vector.shape_cast %70 : vector<1x2x8x8xf32> to vector<2x8x8xf32>
    %72 = vector.shape_cast %69 : vector<2x8x8xf32> to vector<1x2x8x8xf32>
    tpu.vector_store %arg16[%c2_47, %c0_48, %c0_49, %c0_50], %72 {strides = array<i32>} : memref<4x2x8x8xf32, #tpu.memory_space<vmem>>, vector<1x2x8x8xf32>,
    %73 = vector.extract_strided_slice %6 {offsets = [0, 0, 32], sizes = [2, 8, 16], strides = [1, 1, 1]} : vector<2x8x64xf32> to vector<2x8x16xf32>
    "tpu.trace_start"() <{level = 10 : i32, message = "bpq,bqd->bpd"}> : () -> ()
    %cst_51 = arith.constant dense<0.000000e+00> : vector<2x8x16xf32>
    %74 = tpu.matmul %69, %73, %cst_51 {dimension_numbers = #tpu.dot_dimension_numbers<[2], [1], [1], [2], [0, 0, 0, 1, 1, 2], [0], [0]>} : vector<2x8x8xf32>, vector<2x8x16xf32>, vector<2x8x16xf32> -> vector<2x8x16xf32>
    "tpu.trace_stop"() : () -> ()
    %75 = vector.shape_cast %74 : vector<2x8x16xf32> to vector<16x16xf32>
    %c3 = arith.constant 3 : index
    %c0_52 = arith.constant 0 : index
    %c0_53 = arith.constant 0 : index
    %76 = vector.load %arg3[%c3, %c0_52, %c0_53] : memref<4x64x64xf32, #tpu.memory_space<vmem>>, vector<1x64x64xf32>
    %77 = vector.shape_cast %76 : vector<1x64x64xf32> to vector<64x64xf32>
    %cst_54 = arith.constant dense<0.000000e+00> : vector<16x64xf32>
    %78 = tpu.matmul %0, %77, %cst_54 {dimension_numbers = #tpu.dot_dimension_numbers<[1], [0], [0], [1], [0, 0, 1, 1], [], []>} : vector<16x64xf32>, vector<64x64xf32>, vector<16x64xf32> -> vector<16x64xf32>
    %79 = vector.shape_cast %78 : vector<16x64xf32> to vector<2x8x64xf32>
    "tpu.trace_start"() <{level = 10 : i32, message = "bpd,bqd->bpq"}> : () -> ()
    %cst_55 = arith.constant dense<0.000000e+00> : vector<2x8x8xf32>
    %80 = tpu.matmul %79, %5, %cst_55 {dimension_numbers = #tpu.dot_dimension_numbers<[2], [2], [1], [1], [0, 0, 0, 1, 1, 1], [0], [0]>} : vector<2x8x64xf32>, vector<2x8x64xf32>, vector<2x8x8xf32> -> vector<2x8x8xf32>
    "tpu.trace_stop"() : () -> ()
    %c3_56 = arith.constant 3 : index
    %c0_57 = arith.constant 0 : index
    %c0_58 = arith.constant 0 : index
    %c0_59 = arith.constant 0 : index
    %81 = vector.load %arg2[%c3_56, %c0_57, %c0_58, %c0_59] : memref<4x2x8x8xf32, #tpu.memory_space<vmem>>, vector<1x2x8x8xf32>
    %82 = vector.shape_cast %81 : vector<1x2x8x8xf32> to vector<2x8x8xf32>
    %83 = arith.addf %80, %82 : vector<2x8x8xf32>
    %cst_60 = arith.constant dense<0xFF800000> : vector<2x8xf32>
    %84 = vector.multi_reduction <maximumf>, %83, %cst_60 [2] : vector<2x8x8xf32> to vector<2x8xf32>
    %85 = vector.shape_cast %84 : vector<2x8xf32> to vector<2x8x1xf32>
    %86 = vector.broadcast %85 : vector<2x8x1xf32> to vector<2x8x8xf32>
    %87 = arith.subf %83, %86 : vector<2x8x8xf32>
    %88 = math.exp %87 : vector<2x8x8xf32>
    %cst_61 = arith.constant dense<0.000000e+00> : vector<2x8xf32>
    %89 = vector.multi_reduction <add>, %88, %cst_61 [2] : vector<2x8x8xf32> to vector<2x8xf32>
    %90 = vector.shape_cast %89 : vector<2x8xf32> to vector<2x8x1xf32>
    %91 = vector.broadcast %90 : vector<2x8x1xf32> to vector<2x8x8xf32>
    %92 = arith.divf %88, %91 : vector<2x8x8xf32>
    %c3_62 = arith.constant 3 : index
    %c0_63 = arith.constant 0 : index
    %c0_64 = arith.constant 0 : index
    %c0_65 = arith.constant 0 : index
    %93 = vector.load %arg16[%c3_62, %c0_63, %c0_64, %c0_65] : memref<4x2x8x8xf32, #tpu.memory_space<vmem>>, vector<1x2x8x8xf32>
    %94 = vector.shape_cast %93 : vector<1x2x8x8xf32> to vector<2x8x8xf32>
    %95 = vector.shape_cast %92 : vector<2x8x8xf32> to vector<1x2x8x8xf32>
    tpu.vector_store %arg16[%c3_62, %c0_63, %c0_64, %c0_65], %95 {strides = array<i32>} : memref<4x2x8x8xf32, #tpu.memory_space<vmem>>, vector<1x2x8x8xf32>,
    %96 = vector.extract_strided_slice %6 {offsets = [0, 0, 48], sizes = [2, 8, 16], strides = [1, 1, 1]} : vector<2x8x64xf32> to vector<2x8x16xf32>
    "tpu.trace_start"() <{level = 10 : i32, message = "bpq,bqd->bpd"}> : () -> ()
    %cst_66 = arith.constant dense<0.000000e+00> : vector<2x8x16xf32>
    %97 = tpu.matmul %92, %96, %cst_66 {dimension_numbers = #tpu.dot_dimension_numbers<[2], [1], [1], [2], [0, 0, 0, 1, 1, 2], [0], [0]>} : vector<2x8x8xf32>, vector<2x8x16xf32>, vector<2x8x16xf32> -> vector<2x8x16xf32>
    "tpu.trace_stop"() : () -> ()
    %98 = vector.shape_cast %97 : vector<2x8x16xf32> to vector<16x16xf32>
    %99 = tpu.concatenate %29, %52, %75, %98 in 1 : vector<16x16xf32>, vector<16x16xf32>, vector<16x16xf32>, vector<16x16xf32> -> vector<16x64xf32>
    %c0_67 = arith.constant 0 : index
    %c0_68 = arith.constant 0 : index
    %100 = vector.load %arg6[%c0_67, %c0_68] : memref<64x64xf32, #tpu.memory_space<vmem>>, vector<64x64xf32>
    %cst_69 = arith.constant dense<0.000000e+00> : vector<16x64xf32>
    %101 = tpu.matmul %99, %100, %cst_69 {dimension_numbers = #tpu.dot_dimension_numbers<[1], [0], [0], [1], [0, 0, 1, 1], [], []>} : vector<16x64xf32>, vector<64x64xf32>, vector<16x64xf32> -> vector<16x64xf32>
    %102 = arith.addf %0, %101 : vector<16x64xf32>
    %cst_70 = arith.constant dense<0.000000e+00> : vector<16xf32>
    %103 = vector.multi_reduction <add>, %102, %cst_70 [1] : vector<16x64xf32> to vector<16xf32>
    %104 = vector.shape_cast %103 : vector<16xf32> to vector<16x1xf32>
    %cst_71 = arith.constant 6.400000e+01 : f32
    %105 = vector.broadcast %cst_71 : f32 to vector<16x1xf32>
    %106 = arith.divf %104, %105 : vector<16x1xf32>
    %107 = vector.broadcast %106 : vector<16x1xf32> to vector<16x64xf32>
    %108 = arith.subf %102, %107 : vector<16x64xf32>
    %109 = arith.mulf %108, %108 : vector<16x64xf32>
    %cst_72 = arith.constant dense<0.000000e+00> : vector<16xf32>
    %110 = vector.multi_reduction <add>, %109, %cst_72 [1] : vector<16x64xf32> to vector<16xf32>
    %111 = vector.shape_cast %110 : vector<16xf32> to vector<16x1xf32>
    %cst_73 = arith.constant 6.400000e+01 : f32
    %112 = vector.broadcast %cst_73 : f32 to vector<16x1xf32>
    %113 = arith.divf %111, %112 : vector<16x1xf32>
    %114 = vector.broadcast %106 : vector<16x1xf32> to vector<16x64xf32>
    %115 = arith.subf %102, %114 : vector<16x64xf32>
    %cst_74 = arith.constant 9.99999974E-6 : f32
    %116 = vector.broadcast %cst_74 : f32 to vector<16x1xf32>
    %117 = arith.addf %113, %116 : vector<16x1xf32>
    %118 = math.rsqrt %117 : vector<16x1xf32>
    %119 = vector.broadcast %118 : vector<16x1xf32> to vector<16x64xf32>
    %120 = arith.mulf %115, %119 : vector<16x64xf32>
    %c0_75 = arith.constant 0 : index
    %c0_76 = arith.constant 0 : index
    %121 = vector.load %arg7[%c0_75, %c0_76] : memref<1x64xf32, #tpu.memory_space<vmem>>, vector<1x64xf32>
    %122 = vector.broadcast %121 : vector<1x64xf32> to vector<16x64xf32>
    %123 = arith.mulf %120, %122 : vector<16x64xf32>
    %c0_77 = arith.constant 0 : index
    %c0_78 = arith.constant 0 : index
    %124 = vector.load %arg8[%c0_77, %c0_78] : memref<1x64xf32, #tpu.memory_space<vmem>>, vector<1x64xf32>
    %125 = vector.broadcast %124 : vector<1x64xf32> to vector<16x64xf32>
    %126 = arith.addf %123, %125 : vector<16x64xf32>
    %c0_79 = arith.constant 0 : index
    %c0_80 = arith.constant 0 : index
    %127 = vector.load %arg9[%c0_79, %c0_80] : memref<64x128xf32, #tpu.memory_space<vmem>>, vector<64x128xf32>
    %cst_81 = arith.constant dense<0.000000e+00> : vector<16x128xf32>
    %128 = tpu.matmul %126, %127, %cst_81 {dimension_numbers = #tpu.dot_dimension_numbers<[1], [0], [0], [1], [0, 0, 1, 1], [], []>} : vector<16x64xf32>, vector<64x128xf32>, vector<16x128xf32> -> vector<16x128xf32>
    %c0_82 = arith.constant 0 : index
    %c0_83 = arith.constant 0 : index
    %129 = vector.load %arg10[%c0_82, %c0_83] : memref<1x128xf32, #tpu.memory_space<vmem>>, vector<1x128xf32>
    %130 = vector.broadcast %129 : vector<1x128xf32> to vector<16x128xf32>
    %131 = arith.addf %128, %130 : vector<16x128xf32>
    %132 = vector.extract_strided_slice %131 {offsets = [0, 0], sizes = [16, 64], strides = [1, 1]} : vector<16x128xf32> to vector<16x64xf32>
    %133 = vector.extract_strided_slice %131 {offsets = [0, 64], sizes = [16, 64], strides = [1, 1]} : vector<16x128xf32> to vector<16x64xf32>
    %cst_84 = arith.constant 0.000000e+00 : f32
    %134 = vector.broadcast %cst_84 : f32 to vector<16x64xf32>
    %135 = arith.maximumf %133, %134 : vector<16x64xf32>
    %136 = arith.mulf %132, %135 : vector<16x64xf32>
    %c0_85 = arith.constant 0 : index
    %c0_86 = arith.constant 0 : index
    %137 = vector.load %arg11[%c0_85, %c0_86] : memref<64x64xf32, #tpu.memory_space<vmem>>, vector<64x64xf32>
    %cst_87 = arith.constant dense<0.000000e+00> : vector<16x64xf32>
    %138 = tpu.matmul %136, %137, %cst_87 {dimension_numbers = #tpu.dot_dimension_numbers<[1], [0], [0], [1], [0, 0, 1, 1], [], []>} : vector<16x64xf32>, vector<64x64xf32>, vector<16x64xf32> -> vector<16x64xf32>
    %c0_88 = arith.constant 0 : index
    %c0_89 = arith.constant 0 : index
    %139 = vector.load %arg12[%c0_88, %c0_89] : memref<1x64xf32, #tpu.memory_space<vmem>>, vector<1x64xf32>
    %140 = vector.broadcast %139 : vector<1x64xf32> to vector<16x64xf32>
    %141 = arith.addf %138, %140 : vector<16x64xf32>
    %142 = arith.addf %126, %141 : vector<16x64xf32>
    %cst_90 = arith.constant dense<0.000000e+00> : vector<16xf32>
    %143 = vector.multi_reduction <add>, %142, %cst_90 [1] : vector<16x64xf32> to vector<16xf32>
    %144 = vector.shape_cast %143 : vector<16xf32> to vector<16x1xf32>
    %cst_91 = arith.constant 6.400000e+01 : f32
    %145 = vector.broadcast %cst_91 : f32 to vector<16x1xf32>
    %146 = arith.divf %144, %145 : vector<16x1xf32>
    %147 = vector.broadcast %146 : vector<16x1xf32> to vector<16x64xf32>
    %148 = arith.subf %142, %147 : vector<16x64xf32>
    %149 = arith.mulf %148, %148 : vector<16x64xf32>
    %cst_92 = arith.constant dense<0.000000e+00> : vector<16xf32>
    %150 = vector.multi_reduction <add>, %149, %cst_92 [1] : vector<16x64xf32> to vector<16xf32>
    %151 = vector.shape_cast %150 : vector<16xf32> to vector<16x1xf32>
    %cst_93 = arith.constant 6.400000e+01 : f32
    %152 = vector.broadcast %cst_93 : f32 to vector<16x1xf32>
    %153 = arith.divf %151, %152 : vector<16x1xf32>
    %154 = vector.broadcast %146 : vector<16x1xf32> to vector<16x64xf32>
    %155 = arith.subf %142, %154 : vector<16x64xf32>
    %cst_94 = arith.constant 9.99999974E-6 : f32
    %156 = vector.broadcast %cst_94 : f32 to vector<16x1xf32>
    %157 = arith.addf %153, %156 : vector<16x1xf32>
    %158 = math.rsqrt %157 : vector<16x1xf32>
    %159 = vector.broadcast %158 : vector<16x1xf32> to vector<16x64xf32>
    %160 = arith.mulf %155, %159 : vector<16x64xf32>
    %c0_95 = arith.constant 0 : index
    %c0_96 = arith.constant 0 : index
    %161 = vector.load %arg13[%c0_95, %c0_96] : memref<1x64xf32, #tpu.memory_space<vmem>>, vector<1x64xf32>
    %162 = vector.broadcast %161 : vector<1x64xf32> to vector<16x64xf32>
    %163 = arith.mulf %160, %162 : vector<16x64xf32>
    %c0_97 = arith.constant 0 : index
    %c0_98 = arith.constant 0 : index
    %164 = vector.load %arg14[%c0_97, %c0_98] : memref<1x64xf32, #tpu.memory_space<vmem>>, vector<1x64xf32>
    %165 = vector.broadcast %164 : vector<1x64xf32> to vector<16x64xf32>
    %166 = arith.addf %163, %165 : vector<16x64xf32>
    %c0_99 = arith.constant 0 : index
    %c0_100 = arith.constant 0 : index
    %167 = vector.load %arg15[%c0_99, %c0_100] : memref<16x64xf32, #tpu.memory_space<vmem>>, vector<16x64xf32>
    tpu.vector_store %arg15[%c0_99, %c0_100], %166 {strides = array<i32>} : memref<16x64xf32, #tpu.memory_space<vmem>>, vector<16x64xf32>,
    return
  }
  func.func @transform_0(%arg0: i32) -> (i32, i32) {
    %c0_i32 = arith.constant 0 : i32
    %c0_i32_0 = arith.constant 0 : i32
    %c0_i32_1 = arith.constant 0 : i32
    return %c0_i32, %c0_i32_0 : i32, i32
  }
  func.func @transform_1(%arg0: i32) -> (i32, i32, i32, i32) {
    %c0_i32 = arith.constant 0 : i32
    %c0_i32_0 = arith.constant 0 : i32
    %c0_i32_1 = arith.constant 0 : i32
    %c0_i32_2 = arith.constant 0 : i32
    %c0_i32_3 = arith.constant 0 : i32
    return %c0_i32, %c0_i32_0, %c0_i32_1, %c0_i32_2 : i32, i32, i32, i32
  }
  func.func @transform_2(%arg0: i32) -> (i32, i32, i32) {
    %c0_i32 = arith.constant 0 : i32
    %c0_i32_0 = arith.constant 0 : i32
    %c0_i32_1 = arith.constant 0 : i32
    %c0_i32_2 = arith.constant 0 : i32
    return %c0_i32, %c0_i32_0, %c0_i32_1 : i32, i32, i32
  }
  func.func @transform_3(%arg0: i32) -> (i32, i32) {
    %c0_i32 = arith.constant 0 : i32
    %c0_i32_0 = arith.constant 0 : i32
    %c0_i32_1 = arith.constant 0 : i32
    return %c0_i32, %c0_i32_0 : i32, i32
  }
  func.func @transform_4(%arg0: i32) -> (i32, i32) {
    %c0_i32 = arith.constant 0 : i32
    %c0_i32_0 = arith.constant 0 : i32
    %c0_i32_1 = arith.constant 0 : i32
    return %c0_i32, %c0_i32_0 : i32, i32
  }
  func.func @transform_5(%arg0: i32) -> (i32, i32) {
    %c0_i32 = arith.constant 0 : i32
    %c0_i32_0 = arith.constant 0 : i32
    %c0_i32_1 = arith.constant 0 : i32
    return %c0_i32, %c0_i32_0 : i32, i32
  }
  func.func @transform_6(%arg0: i32) -> (i32, i32) {
    %c0_i32 = arith.constant 0 : i32
    %c0_i32_0 = arith.constant 0 : i32
    %c0_i32_1 = arith.constant 0 : i32
    return %c0_i32, %c0_i32_0 : i32, i32
  }
  func.func @transform_7(%arg0: i32) -> (i32, i32) {
    %c0_i32 = arith.constant 0 : i32
    %c0_i32_0 = arith.constant 0 : i32
    %c0_i32_1 = arith.constant 0 : i32
    return %c0_i32, %c0_i32_0 : i32, i32
  }
  func.func @transform_8(%arg0: i32) -> (i32, i32) {
    %c0_i32 = arith.constant 0 : i32
    %c0_i32_0 = arith.constant 0 : i32
    %c0_i32_1 = arith.constant 0 : i32
    return %c0_i32, %c0_i32_0 : i32, i32
  }
  func.func @transform_9(%arg0: i32) -> (i32, i32) {
    %c0_i32 = arith.constant 0 : i32
    %c0_i32_0 = arith.constant 0 : i32
    %c0_i32_1 = arith.constant 0 : i32
    return %c0_i32, %c0_i32_0 : i32, i32
  }
  func.func @transform_10(%arg0: i32) -> (i32, i32) {
    %c0_i32 = arith.constant 0 : i32
    %c0_i32_0 = arith.constant 0 : i32
    %c0_i32_1 = arith.constant 0 : i32
    return %c0_i32, %c0_i32_0 : i32, i32
  }
  func.func @transform_11(%arg0: i32) -> (i32, i32) {
    %c0_i32 = arith.constant 0 : i32
    %c0_i32_0 = arith.constant 0 : i32
    %c0_i32_1 = arith.constant 0 : i32
    return %c0_i32, %c0_i32_0 : i32, i32
  }
  func.func @transform_12(%arg0: i32) -> (i32, i32) {
    %c0_i32 = arith.constant 0 : i32
    %c0_i32_0 = arith.constant 0 : i32
    %c0_i32_1 = arith.constant 0 : i32
    return %c0_i32, %c0_i32_0 : i32, i32
  }
  func.func @transform_13(%arg0: i32) -> (i32, i32) {
    %c0_i32 = arith.constant 0 : i32
    %c0_i32_0 = arith.constant 0 : i32
    %c0_i32_1 = arith.constant 0 : i32
    return %c0_i32, %c0_i32_0 : i32, i32
  }
  func.func @transform_14(%arg0: i32) -> (i32, i32) {
    %c0_i32 = arith.constant 0 : i32
    %c0_i32_0 = arith.constant 0 : i32
    %c0_i32_1 = arith.constant 0 : i32
    return %c0_i32, %c0_i32_0 : i32, i32
  }
  func.func @transform_15(%arg0: i32) -> (i32, i32, i32, i32) {
    %c0_i32 = arith.constant 0 : i32
    %c0_i32_0 = arith.constant 0 : i32
    %c0_i32_1 = arith.constant 0 : i32
    %c0_i32_2 = arith.constant 0 : i32
    %c0_i32_3 = arith.constant 0 : i32
    return %c0_i32, %c0_i32_0, %c0_i32_1, %c0_i32_2 : i32, i32, i32, i32
  }
}

</mosaic_0001>

<bundles_post_ra>
// kernel: tpu_custom_call.1
= control target key start
LH: loop header
LB: loop body
LE: loop exit
PB: predicated region body
PF: predicated region fallthrough
CT: control target
= control target key end

     0   :  { %21 = vsyncpa [#allocation3], 0  ;;  %s3768_s0 = inlined_call_operand.hbm [shape: f32[16,64], index: 0, kind: input, shape index: {}]   ;;  %s3769_s1 = inlined_call_operand.hbm [shape: f32[4,2,8,8], index: 1, kind: input, shape index: {}]   ;;  %s3770_s2 = inlined_call_operand.hbm [shape: f32[4,64,64], index: 2, kind: input, shape index: {}]   ;;  %s3771_s3 = inlined_call_operand.hbm [shape: f32[64,64], index: 3, kind: input, shape index: {}]   ;;  %s3772_s4 = inlined_call_operand.hbm [shape: f32[64,64], index: 4, kind: input, shape index: {}]   ;;  %s3773_s5 = inlined_call_operand.hbm [shape: f32[64,64], index: 5, kind: input, shape index: {}]   ;;  %s3774_s6 = inlined_call_operand.vmem [shape: f32[1,64], index: 6, kind: input, shape index: {}]   ;;  %s3775_s7 = inlined_call_operand.vmem [shape: f32[1,64], index: 7, kind: input, shape index: {}]   ;;  %s3776_s8 = inlined_call_operand.hbm [shape: f32[64,128], index: 8, kind: input, shape index: {}]   ;;  %s3777_s9 = inlined_call_operand.vmem [shape: f32[1,128], index: 9, kind: input, shape index: {}]   ;;  %s3778_s10 = inlined_call_operand.hbm [shape: f32[64,64], index: 10, kind: input, shape index: {}]   ;;  %s3779_s11 = inlined_call_operand.vmem [shape: f32[1,64], index: 11, kind: input, shape index: {}]   ;;  %s3780_s12 = inlined_call_operand.vmem [shape: f32[1,64], index: 12, kind: input, shape index: {}]   ;;  %s3781_s13 = inlined_call_operand.vmem [shape: f32[1,64], index: 13, kind: input, shape index: {}]   ;;  %s3782_s14 = inlined_call_operand.hbm [shape: f32[16,64], index: 14, kind: output, shape index: {0}]   ;;  %s3783_s15 = inlined_call_operand.hbm [shape: f32[4,2,8,8], index: 15, kind: output, shape index: {1}]  }
   0x1   :  { %22 = vsyncpa [#allocation6], 0 }
   0x2   :  { %23 = vsyncpa [#allocation9], 0 }
   0x3   :  { %24 = vsyncpa [#allocation12], 0 }
   0x4   :  { %25 = vsyncpa [#allocation15], 0 }
   0x5   :  { %26 = vsyncpa [#allocation4], 0 }
   0x6   :  { %27 = vsyncpa [#allocation18], 0  ;;  %s3293_s18 = smov [#allocation5]   ;;  %s3294_s20 = smov [#allocation8]  }
   0x7   :  { %s45_s19 = sshll.u32 %s3293_s18, 4  ;;  %s69_s21 = sshll.u32 %s3294_s20, 4  ;;  %s46_s19 = int_to_ptr.vmem [resolvable:$true] %s45_s19  ;;  %s3394_s21 = int_to_ptr.vmem [resolvable:$true] %s69_s21 }
   0x8   :  { %s3059_s24 = scalar_lea.hbm %s3769_s1, 1024 }
   0x9   :  { %p3060_p0 = scmp.ne.s32.totalorder %s3769_s1, %s3059_s24  ;;  %p3063_p1 = scmp.lt.u32.totalorder %s3059_s24, %s3769_s1 }
   0xb   :  { %p3065_p2 = pnand %p3063_p1, %p3060_p0 }
   0xd   :  { %3068 = shalt.err (!%p3065_p2)
}
   0xe   :  { %s3069_s29 = scalar_lea.vmem %s46_s19, 1024  ;;  %p3074_p4 = scmp.lt.s32.totalorder %s46_s19, %s46_s19 }
   0xf   :  { %p3070_p3 = scmp.ne.s32.totalorder %s46_s19, %s3069_s29  ;;  %p3075_p5 = scmp.lt.s32.totalorder %s3069_s29, %s3069_s29 }
  0x11   :  { %p3076_p6 = por %p3075_p5, %p3074_p4 }
  0x13   :  { %p3077_p7 = pnand %p3076_p6, %p3070_p3 }
  0x15   :  { %3080 = shalt.err (!%p3077_p7)
}
  0x16   :  { %s3295_s30 = smov 128   ;;  %s3296_s16 = smov 8  }
  0x17   :  { %51 = dma.hbm_to_vmem [thread:$0]  %s3769_s1, 1024, %s46_s19, [#allocation6], %s3295_s30, %s3295_s30, %s3296_s16  }
  0x18   :  { %s3081_s23 = scalar_lea.hbm %s3771_s3, 1024 }
  0x19   :  { %p3082_p8 = scmp.ne.s32.totalorder %s3771_s3, %s3081_s23  ;;  %p3085_p9 = scmp.lt.u32.totalorder %s3081_s23, %s3771_s3 }
  0x1b   :  { %p3087_p10 = pnand %p3085_p9, %p3082_p8 }
  0x1d   :  { %3090 = shalt.err (!%p3087_p10)
}
  0x1e   :  { %s3091_s28 = scalar_lea.vmem %s3394_s21, 1024  ;;  %p3096_p12 = scmp.lt.s32.totalorder %s3394_s21, %s3394_s21 }
  0x1f   :  { %p3092_p11 = scmp.ne.s32.totalorder %s3394_s21, %s3091_s28  ;;  %p3097_p13 = scmp.lt.s32.totalorder %s3091_s28, %s3091_s28 }
  0x21   :  { %p3098_p0 = por %p3097_p13, %p3096_p12 }
  0x23   :  { %p3099_p1 = pnand %p3098_p0, %p3092_p11 }
  0x25   :  { %3102 = shalt.err (!%p3099_p1)
}
  0x26   :  { %75 = dma.hbm_to_vmem [thread:$0]  %s3771_s3, 1024, %s3394_s21, [#allocation9], %s3295_s30, %s3295_s30, %s3296_s16  }
  0x27   :  { %s3297_s29 = smov [#allocation11]   ;;  %s3298_s18 = smov [#allocation2]  }
  0x28   :  { %s93_s17 = sshll.u32 %s3297_s29, 4  ;;  %s33_s20 = sshll.u32 %s3298_s18, 4  ;;  %s94_s17 = int_to_ptr.vmem [resolvable:$true] %s93_s17  ;;  %s3431_s20 = int_to_ptr.vmem [resolvable:$true] %s33_s20 }
  0x29   :  { %s3103_s24 = scalar_lea.hbm %s3773_s5, 1024 }
  0x2a   :  { %p3104_p2 = scmp.ne.s32.totalorder %s3773_s5, %s3103_s24  ;;  %p3107_p3 = scmp.lt.u32.totalorder %s3103_s24, %s3773_s5 }
  0x2c   :  { %p3109_p4 = pnand %p3107_p3, %p3104_p2 }
  0x2e   :  { %3112 = shalt.err (!%p3109_p4)
}
  0x2f   :  { %s3113_s3 = scalar_lea.vmem %s94_s17, 1024  ;;  %p3118_p6 = scmp.lt.s32.totalorder %s94_s17, %s94_s17 }
  0x30   :  { %p3114_p5 = scmp.ne.s32.totalorder %s94_s17, %s3113_s3  ;;  %p3119_p7 = scmp.lt.s32.totalorder %s3113_s3, %s3113_s3 }
  0x32   :  { %p3120_p8 = por %p3119_p7, %p3118_p6 }
  0x34   :  { %p3121_p9 = pnand %p3120_p8, %p3114_p5 }
  0x36   :  { %3124 = shalt.err (!%p3121_p9)
}
  0x37   :  { %99 = dma.hbm_to_vmem [thread:$0]  %s3773_s5, 1024, %s94_s17, [#allocation12], %s3295_s30, %s3295_s30, %s3296_s16  }
  0x38   :  { %s3125_s18 = scalar_lea.hbm %s3768_s0, 256 }
  0x39   :  { %p3126_p10 = scmp.ne.s32.totalorder %s3768_s0, %s3125_s18  ;;  %p3129_p11 = scmp.lt.u32.totalorder %s3125_s18, %s3768_s0 }
  0x3b   :  { %p3131_p12 = pnand %p3129_p11, %p3126_p10 }
  0x3d   :  { %3134 = shalt.err (!%p3131_p12)
}
  0x3e   :  { %s3135_s26 = scalar_lea.vmem %s3431_s20, 256  ;;  %p3140_p0 = scmp.lt.s32.totalorder %s3431_s20, %s3431_s20 }
  0x3f   :  { %p3136_p13 = scmp.ne.s32.totalorder %s3431_s20, %s3135_s26  ;;  %p3141_p1 = scmp.lt.s32.totalorder %s3135_s26, %s3135_s26 }
  0x41   :  { %p3142_p2 = por %p3141_p1, %p3140_p0 }
  0x43   :  { %p3143_p3 = pnand %p3142_p2, %p3136_p13 }
  0x45   :  { %3146 = shalt.err (!%p3143_p3)
}
  0x46   :  { %39 = dma.hbm_to_vmem [thread:$0]  %s3768_s0, 256, %s3431_s20, [#allocation3], %s3295_s30, %s3295_s30, %s3296_s16  }
  0x47   :  { %s3299_s27 = smov [#allocation7]   ;;  %s3300_s3 = smov [#allocation10]  }
  0x48   :  { %s57_s28 = sshll.u32 %s3299_s27, 4  ;;  %s81_s21 = sshll.u32 %s3300_s3, 4  ;;  %s58_s28 = int_to_ptr.vmem [resolvable:$true] %s57_s28  ;;  %s3468_s21 = int_to_ptr.vmem [resolvable:$true] %s81_s21 }
  0x49   :  { %s3147_s29 = scalar_lea.hbm %s3770_s2, 4096 }
  0x4a   :  { %p3148_p4 = scmp.ne.s32.totalorder %s3770_s2, %s3147_s29  ;;  %p3151_p5 = scmp.lt.u32.totalorder %s3147_s29, %s3770_s2 }
  0x4c   :  { %p3153_p6 = pnand %p3151_p5, %p3148_p4 }
  0x4e   :  { %3156 = shalt.err (!%p3153_p6)
}
  0x4f   :  { %s3157_s0 = scalar_lea.vmem %s58_s28, 4096  ;;  %p3162_p8 = scmp.lt.s32.totalorder %s58_s28, %s58_s28 }
  0x50   :  { %p3158_p7 = scmp.ne.s32.totalorder %s58_s28, %s3157_s0  ;;  %p3163_p9 = scmp.lt.s32.totalorder %s3157_s0, %s3157_s0 }
  0x52   :  { %p3164_p10 = por %p3163_p9, %p3162_p8 }
  0x54   :  { %p3165_p11 = pnand %p3164_p10, %p3158_p7 }
  0x56   :  { %3168 = shalt.err (!%p3165_p11)
}
  0x57   :  { %63 = dma.hbm_to_vmem [thread:$0]  %s3770_s2, 4096, %s58_s28, [#allocation6], %s3295_s30, %s3295_s30, %s3296_s16  }
  0x58   :  { %s3169_s17 = scalar_lea.hbm %s3772_s4, 1024 }
  0x59   :  { %p3170_p12 = scmp.ne.s32.totalorder %s3772_s4, %s3169_s17  ;;  %p3173_p13 = scmp.lt.u32.totalorder %s3169_s17, %s3772_s4 }
  0x5b   :  { %p3175_p0 = pnand %p3173_p13, %p3170_p12 }
  0x5d   :  { %3178 = shalt.err (!%p3175_p0)
}
  0x5e   :  { %s3179_s29 = scalar_lea.vmem %s3468_s21, 1024  ;;  %p3184_p2 = scmp.lt.s32.totalorder %s3468_s21, %s3468_s21 }
  0x5f   :  { %p3180_p1 = scmp.ne.s32.totalorder %s3468_s21, %s3179_s29  ;;  %p3185_p3 = scmp.lt.s32.totalorder %s3179_s29, %s3179_s29 }
  0x61   :  { %p3186_p4 = por %p3185_p3, %p3184_p2 }
  0x63   :  { %p3187_p5 = pnand %p3186_p4, %p3180_p1 }
  0x65   :  { %3190 = shalt.err (!%p3187_p5)
}
  0x66   :  { %87 = dma.hbm_to_vmem [thread:$0]  %s3772_s4, 1024, %s3468_s21, [#allocation9], %s3295_s30, %s3295_s30, %s3296_s16  }
  0x67   :  { %s3301_s18 = smov [#allocation13]   ;;  %s3302_s23 = smov [#allocation14]  }
  0x68   :  { %s109_s22 = sshll.u32 %s3301_s18, 4  ;;  %s123_s24 = sshll.u32 %s3302_s23, 4  ;;  %s110_s22 = int_to_ptr.vmem [resolvable:$true] %s109_s22  ;;  %s3505_s24 = int_to_ptr.vmem [resolvable:$true] %s123_s24 }
  0x69   :  { %s3191_s25 = scalar_lea.hbm %s3776_s8, 1024 }
  0x6a   :  { %p3192_p6 = scmp.ne.s32.totalorder %s3776_s8, %s3191_s25  ;;  %p3195_p7 = scmp.lt.u32.totalorder %s3191_s25, %s3776_s8 }
  0x6c   :  { %p3197_p8 = pnand %p3195_p7, %p3192_p6 }
  0x6e   :  { %3200 = shalt.err (!%p3197_p8)
}
  0x6f   :  { %s3201_s4 = scalar_lea.vmem %s110_s22, 1024  ;;  %p3206_p10 = scmp.lt.s32.totalorder %s110_s22, %s110_s22 }
  0x70   :  { %p3202_p9 = scmp.ne.s32.totalorder %s110_s22, %s3201_s4  ;;  %p3207_p11 = scmp.lt.s32.totalorder %s3201_s4, %s3201_s4 }
  0x72   :  { %p3208_p12 = por %p3207_p11, %p3206_p10 }
  0x74   :  { %p3209_p13 = pnand %p3208_p12, %p3202_p9 }
  0x76   :  { %3212 = shalt.err (!%p3209_p13)
}
  0x77   :  { %115 = dma.hbm_to_vmem [thread:$0]  %s3776_s8, 1024, %s110_s22, [#allocation12], %s3295_s30, %s3295_s30, %s3296_s16  }
  0x78   :  { %s3213_s29 = scalar_lea.hbm %s3778_s10, 1024 }
  0x79   :  { %p3214_p0 = scmp.ne.s32.totalorder %s3778_s10, %s3213_s29  ;;  %p3217_p1 = scmp.lt.u32.totalorder %s3213_s29, %s3778_s10 }
  0x7b   :  { %p3219_p2 = pnand %p3217_p1, %p3214_p0 }
  0x7d   :  { %3222 = shalt.err (!%p3219_p2)
}
  0x7e   :  { %s3223_s0 = scalar_lea.vmem %s3505_s24, 1024  ;;  %p3228_p4 = scmp.lt.s32.totalorder %s3505_s24, %s3505_s24 }
  0x7f   :  { %p3224_p3 = scmp.ne.s32.totalorder %s3505_s24, %s3223_s0  ;;  %p3229_p5 = scmp.lt.s32.totalorder %s3223_s0, %s3223_s0 }
  0x81   :  { %p3230_p6 = por %p3229_p5, %p3228_p4 }
  0x83   :  { %p3231_p7 = pnand %p3230_p6, %p3224_p3 }
  0x85   :  { %3234 = shalt.err (!%p3231_p7)
}
  0x86   :  { %129 = dma.hbm_to_vmem [thread:$0]  %s3778_s10, 1024, %s3505_s24, [#allocation15], %s3295_s30, %s3295_s30, %s3296_s16  }
  0x87   :  { %3279 = dma.done.wait [#allocation3], 256  }
  0x88   :  { %3280 = vsyncadd [#allocation3], 4294967040 }
  0x89   :  { %3281 = dma.done.wait [#allocation6], 5120  }
  0x8a   :  { %3282 = vsyncadd [#allocation6], 4294962176 }
  0x8b   :  { %3283 = dma.done.wait [#allocation9], 2048  }
  0x8c   :  { %3284 = vsyncadd [#allocation9], 4294965248 }
  0x8d   :  { %3285 = dma.done.wait [#allocation12], 2048  }
  0x8e   :  { %3286 = vsyncadd [#allocation12], 4294965248 }
  0x8f   :  { %3287 = dma.done.wait [#allocation15], 1024  }
  0x90   :  { %3288 = vsyncadd [#allocation15], 4294966272  ;;  %v162_v0 = vld [vmem:[#allocation8] sm:$0xff]  ;;  %v163_v1 = vld [vmem:[#allocation8 + $0x8] sm:$0xff]  ;;  %vm170_vm0 = vcmask 523264   ;;  %v3303_v38 = vmov 0.0  }
  0x91   :  { %v164_v2 = vld [vmem:[#allocation8 + $0x10] sm:$0xff]  ;;  %v2854_v3 = vpack.c.bf16 %v163_v1, %v162_v0  ;;  %v165_v4 = vld [vmem:[#allocation8 + $0x18] sm:$0xff]  ;;  %v166_v6 = vld [vmem:[#allocation8 + $0x20] sm:$0xff]  ;;  %vm3304_vm1 = vmmov 0   ;;  %vm572_vm2 = vcmask 64512   ;;  %s3305_s10 = smov 112  }
  0x92   :  { %v2858_v5 = vpack.c.bf16 %v165_v4, %v164_v2  ;;  %v167_v7 = vld [vmem:[#allocation8 + $0x28] sm:$0xff]  ;;  %v3542_v8 = vld [vmem:[#allocation2] sm:$0xff]  ;;  %v169_v11 = vld [vmem:[#allocation8 + $0x38] sm:$0xff]  ;;  %s3306_s24 = smov 96   ;;  %s3307_s20 = smov 80   ;;  %vm1999_vm3 = vcmask 130048  }
  0x93   :  { %2855 = vmatprep.subr.bf16.mxu0 %v2854_v3  ;;  %2619 = vmatprep.mubr.msk.f32.mxu0 %vm170_vm0, %v3542_v8  ;;  %v2862_v9 = vpack.c.bf16 %v167_v7, %v166_v6  ;;  %v168_v10 = vld [vmem:[#allocation8 + $0x30] sm:$0xff]  ;;  %v252_v12 = vld [vmem:[#allocation10] sm:$0xff]  ;;  %v253_v13 = vld [vmem:[#allocation10 + $0x8] sm:$0xff]  ;;  %s3308_s25 = smov 16   ;;  %s3309_s26 = smov 32   ;;  %vm2002_vm4 = vcmask 261120  }
  0x94   :  { %2857 = vmatpush3.bf16.msra.mxu0 %v2854_v3  ;;  %2638 = vmatprep.mubr.msk.f32.mxu1 %vm170_vm0, %v3542_v8  ;;  %v254_v14 = vld [vmem:[#allocation10 + $0x10] sm:$0xff]  ;;  %v2870_v15 = vpack.c.bf16 %v253_v13, %v252_v12  ;;  %v255_v16 = vld [vmem:[#allocation10 + $0x18] sm:$0xff]  ;;  %v256_v18 = vld [vmem:[#allocation10 + $0x20] sm:$0xff]  ;;  %v2866_v20 = vpack.c.bf16 %v169_v11, %v168_v10  ;;  %s3310_s5 = smov 48   ;;  %vm2005_vm5 = vcmask 392192   ;;  %s3311_s3 = smov 64  }
  0x95   :  { %2859 = vmatprep.subr.bf16.mxu0 %v2858_v5  ;;  %v2874_v17 = vpack.c.bf16 %v255_v16, %v254_v14  ;;  %v257_v19 = vld [vmem:[#allocation10 + $0x28] sm:$0xff]  ;;  %v335_v21 = vld [vmem:[#allocation7] sm:$0xff]  ;;  %v258_v24 = vld [vmem:[#allocation10 + $0x30] sm:$0xff] }
  0x96   :  { %2871 = vmatprep.subr.bf16.mxu1 %v2870_v15  ;;  %v336_v22 = vld [vmem:[#allocation7 + $0x8] sm:$0xff]  ;;  %v2878_v23 = vpack.c.bf16 %v257_v19, %v256_v18  ;;  %v259_v25 = vld [vmem:[#allocation10 + $0x38] sm:$0xff]  ;;  %v337_v27 = vld [vmem:[#allocation7 + $0x10] sm:$0xff] }
  0x97   :  { %2873 = vmatpush3.bf16.msra.mxu1 %v2870_v15  ;;  %v2886_v26 = vpack.c.bf16 %v336_v22, %v335_v21  ;;  %v338_v28 = vld [vmem:[#allocation7 + $0x18] sm:$0xff]  ;;  %v2882_v29 = vpack.c.bf16 %v259_v25, %v258_v24  ;;  %v339_v32 = vld [vmem:[#allocation7 + $0x20] sm:$0xff]  ;;  %v340_v33 = vld [vmem:[#allocation7 + $0x28] sm:$0xff] }
  0x98   :  { %2861 = vmatpush3.bf16.msra.mxu0 %v2858_v5  ;;  %2875 = vmatprep.subr.bf16.mxu1 %v2874_v17  ;;  %v3548_v30 = vld [vmem:[#allocation2 + $0x8] sm:$0xff]  ;;  %v2890_v31 = vpack.c.bf16 %v338_v28, %v337_v27  ;;  %v2894_v34 = vpack.c.bf16 %v340_v33, %v339_v32  ;;  %v341_v35 = vld [vmem:[#allocation7 + $0x30] sm:$0xff]  ;;  %v744_v45 = vld [vmem:[#allocation7 + $0x40] sm:$0xff] }
  0x99   :  { %2863 = vmatprep.subr.bf16.mxu0 %v2862_v9  ;;  %v342_v36 = vld [vmem:[#allocation7 + $0x38] sm:$0xff]  ;;  %v745_v46 = vld [vmem:[#allocation7 + $0x48] sm:$0xff]  ;;  %v746_v47 = vld [vmem:[#allocation7 + $0x50] sm:$0xff] }
  0x9a   :  { %v2898_v37 = vpack.c.bf16 %v342_v36, %v341_v35  ;;  %v2902_v48 = vpack.c.bf16 %v745_v46, %v744_v45  ;;  %v747_v49 = vld [vmem:[#allocation7 + $0x58] sm:$0xff]  ;;  %v748_v51 = vld [vmem:[#allocation7 + $0x60] sm:$0xff]  ;;  %v749_v52 = vld [vmem:[#allocation7 + $0x68] sm:$0xff] }
  0x9b   :  { %2877 = vmatpush3.bf16.msra.mxu1 %v2874_v17  ;;  %v2906_v50 = vpack.c.bf16 %v747_v49, %v746_v47  ;;  %v2910_v53 = vpack.c.bf16 %v749_v52, %v748_v51  ;;  %v750_v54 = vld [vmem:[#allocation7 + $0x70] sm:$0xff]  ;;  %v751_v55 = vld [vmem:[#allocation7 + $0x78] sm:$0xff]  ;;  %v418_v57 = vld [vmem:[#allocation5] sm:$0xff] }
  0x9c   :  { %2865 = vmatpush3.bf16.msra.mxu0 %v2862_v9  ;;  %2879 = vmatprep.subr.bf16.mxu1 %v2878_v23  ;;  %v2914_v56 = vpack.c.bf16 %v751_v55, %v750_v54  ;;  %v419_v61 = vld [vmem:[#allocation5 + $0x8] sm:$0xff]  ;;  %v1156_v22 = vld [vmem:[#allocation7 + $0x80] sm:$0xff]  ;;  %v1158_v24 = vld [vmem:[#allocation7 + $0x90] sm:$0xff] }
  0x9d   :  { %2867 = vmatprep.subr.bf16.mxu0 %v2866_v20  ;;  %v1160_v28 = vld [vmem:[#allocation7 + $0xa0] sm:$0xff]  ;;  %v1162_v32 = vld [vmem:[#allocation7 + $0xb0] sm:$0xff]  ;;  %v1163_v33 = vld [vmem:[#allocation7 + $0xb8] sm:$0xff] }
  0x9f   :  { %2881 = vmatpush3.bf16.msra.mxu1 %v2878_v23  ;;  %v1157_v23 = vld [vmem:[#allocation7 + $0x88] sm:$0xff] }
  0xa0   :  { %2869 = vmatpush3.bf16.msra.mxu0 %v2866_v20  ;;  %2883 = vmatprep.subr.bf16.mxu1 %v2882_v29  ;;  %v2918_v25 = vpack.c.bf16 %v1157_v23, %v1156_v22 }
  0xa1   :  { %2887 = vmatprep.subr.bf16.mxu0 %v2886_v26 }
  0xa3   :  { %2620 = vmatmul.mubr.msk.f32.vlgmr.msra.gmra.mrb[0].mxu0 %vm170_vm0, %v3548_v30  ;;  %2885 = vmatpush3.bf16.msra.mxu1 %v2882_v29  ;;  %v1161_v29 = vld [vmem:[#allocation7 + $0xa8] sm:$0xff] }
  0xa4   :  { %2889 = vmatpush3.bf16.msra.mxu0 %v2886_v26  ;;  %2657 = vmatprep.mubr.msk.f32.mxu0 %vm170_vm0, %v3542_v8  ;;  %v1159_v26 = vld [vmem:[#allocation7 + $0x98] sm:$0xff] }
  0xa5   :  { %2891 = vmatprep.subr.bf16.mxu0 %v2890_v31  ;;  %2660 = vmatprep.subr.mxu1 %v3303_v38  ;;  %v2922_v27 = vpack.c.bf16 %v1159_v26, %v1158_v24 }
  0xa6   :  { %2639 = vmatmul.mubr.msk.f32.vlgmr.msra.gmra.mrb[0].mxu1 %vm170_vm0, %v3548_v30 }
  0xa7   :  { %2662 = vmatprep.mubr.msk.f32.mxu1 %vm3304_vm1, %v3303_v38 }
  0xa8   :  { %2893 = vmatpush3.bf16.msra.mxu0 %v2890_v31  ;;  %v2926_v31 = vpack.c.bf16 %v1161_v29, %v1160_v28 }
  0xa9   :  { %2895 = vmatprep.subr.bf16.mxu0 %v2894_v34 }
  0xac   :  { %2897 = vmatpush3.bf16.msra.mxu0 %v2894_v34  ;;  %v2930_v34 = vpack.c.bf16 %v1163_v33, %v1162_v32  ;;  %v1241_v32 = vld [vmem:[#allocation5 + $0x28] sm:$0xff] }
  0xad   :  { %2899 = vmatprep.subr.bf16.mxu0 %v2898_v37 }
  0xb0   :  { %2901 = vmatpush3.bf16.msra.mxu0 %v2898_v37 }
  0xb1   :  { %2903 = vmatprep.subr.bf16.mxu0 %v2902_v48 }
  0xb3   :  { %2658 = vmatmul.mubr.msk.f32.vlgmr.msra.gmra.mrb[2].mxu0 %vm170_vm0, %v3548_v30 }
  0xb4   :  { %2696 = vmatprep.mubr.msk.f32.mxu0 %vm170_vm0, %v3542_v8  ;;  %2905 = vmatpush3.bf16.msra.mxu0 %v2902_v48  ;;  %v829_v48 = vld [vmem:[#allocation5 + $0x18] sm:$0xff] }
  0xb5   :  { %2907 = vmatprep.subr.bf16.mxu0 %v2906_v50 }
  0xb8   :  { %2909 = vmatpush3.bf16.msra.mxu0 %v2906_v50 }
  0xb9   :  { %2911 = vmatprep.subr.bf16.mxu0 %v2910_v53 }
  0xbc   :  { %2913 = vmatpush3.bf16.msra.mxu0 %v2910_v53 }
  0xbd   :  { %2915 = vmatprep.subr.bf16.mxu0 %v2914_v56 }
  0xc0   :  { %2917 = vmatpush3.bf16.msra.mxu0 %v2914_v56 }
  0xc1   :  { %2919 = vmatprep.subr.bf16.mxu0 %v2918_v25 }
  0xc3   :  { %2697 = vmatmul.mubr.msk.f32.vlgmr.msra.gmra.mrb[4].mxu0 %vm170_vm0, %v3548_v30 }
  0xc4   :  { %2735 = vmatprep.mubr.msk.f32.mxu0 %vm170_vm0, %v3542_v8  ;;  %2921 = vmatpush3.bf16.msra.mxu0 %v2918_v25 }
  0xc5   :  { %2923 = vmatprep.subr.bf16.mxu0 %v2922_v27 }
  0xc8   :  { %2925 = vmatpush3.bf16.msra.mxu0 %v2922_v27  ;;  %v1240_v27 = vld [vmem:[#allocation5 + $0x20] sm:$0xff] }
  0xc9   :  { %2927 = vmatprep.subr.bf16.mxu0 %v2926_v31 }
  0xcc   :  { %2929 = vmatpush3.bf16.msra.mxu0 %v2926_v31 }
  0xcd   :  { %2931 = vmatprep.subr.bf16.mxu0 %v2930_v34 }
  0xd0   :  { %2933 = vmatpush3.bf16.msra.mxu0 %v2930_v34 }
  0xd3   :  { %2736 = vmatmul.mubr.msk.f32.vlgmr.msra.gmra.mrb[6].mxu0 %vm170_vm0, %v3548_v30 }
  0xd4   :  { %2774 = vmatprep.mubr.msk.f32.mxu0 %vm170_vm0, %v3542_v8 }
 0x176   :  { %v3563_v39 = vpop.f32.mrb[0].mxu0 }
 0x177   :  { %v3565_v40 = vpop.f32.mrb[1].mxu0 }
 0x178   :  { %2661 = vmatpush3.xpose.msk.msra.mxu1 %vm170_vm0, %v3565_v40 }
 0x179   :  { %2665 = vmatprep.subr.mxu1 %v3303_v38  ;;  %v3570_v41 = vpop.f32.mrb[0].mxu1 }
 0x17a   :  { %v3572_v42 = vpop.f32.mrb[1].mxu1 }
 0x186   :  { %v2659_v43 = vpop.f32.mrb[2].mxu0 }
 0x187   :  { %v409_v44 = vpop.f32.mrb[3].mxu0 }
 0x188   :  { %2663 = vmatmul.mubr.msk.f32.vlgmr.msra.gmra.mrb[2].mxu1 %vm170_vm0, %v409_v44  ;;  %v828_v44 = vld [vmem:[#allocation5 + $0x10] sm:$0xff] }
 0x189   :  { %2666 = vmatpush3.xpose.msk.msra.mxu1 %vm170_vm0, %v3563_v39  ;;  %2667 = vmatprep.mubr.msk.f32.mxu1 %vm3304_vm1, %v3303_v38 }
 0x18a   :  { %2670 = vmatprep.subr.mxu1 %v3303_v38 }
 0x18c   :  { %2668 = vmatmul.mubr.msk.f32.vlgmr.msra.gmra.mrb[4].mxu1 %vm170_vm0, %v2659_v43 }
 0x18d   :  { %2671 = vmatpush3.msra.mxu1 %v3572_v42  ;;  %2672 = vmatprep.mubr.msk.f32.mxu1 %vm3304_vm1, %v3303_v38 }
 0x18e   :  { %2675 = vmatprep.subr.mxu1 %v3303_v38 }
 0x196   :  { %v2698_v14 = vpop.f32.mrb[4].mxu0 }
 0x197   :  { %v818_v15 = vpop.f32.mrb[5].mxu0 }
 0x25b   :  { %v492_v58 = vpop.f32.mrb[2].mxu1 }
 0x25c   :  { %v493_v59 = vadd.f32 %v492_v58, %v418_v57  ;;  %v2664_v60 = vpop.f32.mrb[3].mxu1 }
 0x25e   :  { %v573_v62 = vsel %vm572_vm2, %v493_v59, -inf }
 0x25f   :  { %574 = vmax.xlane.f32.xlu0 %v573_v62  ;;  %v568_v63 = vpop.f32.mrb[4].mxu1 }
 0x260   :  { %v569_v0 = vadd.f32 %v568_v63, %v419_v61  ;;  %v2669_v1 = vpop.f32.mrb[5].mxu1 }
 0x262   :  { %v576_v2 = vsel %vm572_vm2, %v569_v0, -inf }
 0x263   :  { %577 = vmax.xlane.f32.xlu0 %v576_v2 }
 0x2ec   :  { %v575_v3 = vpop.xlane.xlu0 %574 }
 0x2ed   :  { %v579_v4 = vsub.f32 %v493_v59, %v575_v3 }
 0x2ef   :  { %v581_v5 = vmul.f32 1.442695, %v579_v4 }
 0x2f0   :  { %v578_v6 = vpop.xlane.xlu0 %577 }
 0x2f1   :  { %3019 = vpow2.f32 %v581_v5  ;;  %v580_v7 = vsub.f32 %v569_v0, %v578_v6  ;;  %v2737_v0 = vpop.f32.mrb[6].mxu0 }
 0x2f2   :  { %v1230_v1 = vpop.f32.mrb[7].mxu0 }
 0x2f3   :  { %v583_v9 = vmul.f32 1.442695, %v580_v7 }
 0x2f5   :  { %3021 = vpow2.f32 %v583_v9 }
 0x2fb   :  { %v3020_v10 = vpop.eup %3019 }
 0x2fc   :  { %v585_v11 = vsel %vm572_vm2, %v3020_v10, 0.0 }
 0x2fd   :  { %586 = vadd.xlane.f32.xlu1 %v585_v11  ;;  %v1566_v11 = vld [vmem:[#allocation7 + $0xc0] sm:$0xff] }
 0x2ff   :  { %v3022_v12 = vpop.eup %3021 }
 0x300   :  { %v588_v13 = vsel %vm572_vm2, %v3022_v12, 0.0 }
 0x301   :  { %589 = vadd.xlane.f32.xlu1 %v588_v13  ;;  %v1568_v13 = vld [vmem:[#allocation7 + $0xd0] sm:$0xff] }
 0x38a   :  { %v587_v16 = vpop.xlane.xlu1 %586 }
 0x38b   :  { %3023 = vrcp.f32 %v587_v16 }
 0x38e   :  { %v590_v17 = vpop.xlane.xlu1 %589 }
 0x38f   :  { %3025 = vrcp.f32 %v590_v17  ;;  %v1570_v17 = vld [vmem:[#allocation7 + $0xe0] sm:$0xff] }
 0x395   :  { %v3024_v18 = vpop.eup %3023 }
 0x396   :  { %v592_v19 = vmul.f32 %v3024_v18, %v3020_v10  ;;  %v1571_v18 = vld [vmem:[#allocation7 + $0xe8] sm:$0xff] }
 0x398   :  { %595 = vst.msk [vmem:[#allocation17] sm:$0xff] %vm572_vm2, %v592_v19  ;;  %2673 = vmatmul.mubr.msk.f32.vlgmr.msra.gmra.mrb[6].mxu1 %vm572_vm2, %v592_v19  ;;  %v2942_v19 = vpack.c.bf16 %v1571_v18, %v1570_v17 }
 0x399   :  { %v3026_v20 = vpop.eup %3025  ;;  %2676 = vmatpush3.msra.mxu1 %v3570_v41  ;;  %2677 = vmatprep.mubr.msk.f32.mxu1 %vm3304_vm1, %v3303_v38 }
 0x39a   :  { %v594_v21 = vmul.f32 %v3026_v20, %v3022_v12  ;;  %2699 = vmatprep.subr.mxu1 %v3303_v38  ;;  %v1567_v12 = vld [vmem:[#allocation7 + $0xc8] sm:$0xff]  ;;  %v1572_v20 = vld [vmem:[#allocation7 + $0xf0] sm:$0xff] }
 0x39c   :  { %596 = vst.msk [vmem:[#allocation17 + $0x8] sm:$0xff] %vm572_vm2, %v594_v21  ;;  %2678 = vmatmul.mubr.msk.f32.vlgmr.msra.gmra.mrb[8].mxu1 %vm572_vm2, %v594_v21  ;;  %v1573_v21 = vld [vmem:[#allocation7 + $0xf8] sm:$0xff] }
 0x39d   :  { %2701 = vmatprep.mubr.msk.f32.mxu1 %vm3304_vm1, %v3303_v38  ;;  %v2946_v22 = vpack.c.bf16 %v1573_v21, %v1572_v20 }
 0x3a0   :  { %2700 = vmatpush3.xpose.msk.msra.mxu1 %vm170_vm0, %v3565_v40 }
 0x3a1   :  { %2704 = vmatprep.subr.mxu1 %v3303_v38 }
 0x3a3   :  { %2702 = vmatmul.mubr.msk.f32.vlgmr.msra.gmra.mrb[10].mxu1 %vm170_vm0, %v818_v15  ;;  %v1569_v15 = vld [vmem:[#allocation7 + $0xd8] sm:$0xff] }
 0x3a4   :  { %2705 = vmatpush3.xpose.msk.msra.mxu1 %vm170_vm0, %v3563_v39  ;;  %2706 = vmatprep.mubr.msk.f32.mxu1 %vm3304_vm1, %v3303_v38  ;;  %v2938_v16 = vpack.c.bf16 %v1569_v15, %v1568_v13 }
 0x3a5   :  { %2709 = vmatprep.subr.mxu1 %v3303_v38 }
 0x3a7   :  { %2707 = vmatmul.mubr.msk.f32.vlgmr.msra.gmra.mrb[12].mxu1 %vm170_vm0, %v2698_v14  ;;  %v2934_v14 = vpack.c.bf16 %v1567_v12, %v1566_v11 }
 0x3a8   :  { %2711 = vmatprep.mubr.msk.f32.mxu1 %vm3304_vm1, %v3303_v38 }
 0x3a9   :  { %2935 = vmatprep.subr.bf16.mxu0 %v2934_v14 }
 0x3aa   :  { %2937 = vmatpush3.bf16.msra.mxu0 %v2934_v14 }
 0x3ab   :  { %2939 = vmatprep.subr.bf16.mxu0 %v2938_v16 }
 0x3ae   :  { %2941 = vmatpush3.bf16.msra.mxu0 %v2938_v16 }
 0x3af   :  { %2943 = vmatprep.subr.bf16.mxu0 %v2942_v19 }
 0x3b2   :  { %2945 = vmatpush3.bf16.msra.mxu0 %v2942_v19 }
 0x3b3   :  { %2947 = vmatprep.subr.bf16.mxu0 %v2946_v22 }
 0x3b6   :  { %2949 = vmatpush3.bf16.msra.mxu0 %v2946_v22 }
 0x3b9   :  { %2775 = vmatmul.mubr.msk.f32.vlgmr.msra.gmra.mrb[8].mxu0 %vm170_vm0, %v3548_v30 }
 0x46b   :  { %v3619_v35 = vpop.f32.mrb[6].mxu1 }
 0x46c   :  { %v2674_v36 = vpop.f32.mrb[7].mxu1 }
 0x46f   :  { %v3621_v37 = vpop.f32.mrb[8].mxu1 }
 0x470   :  { %v2679_v43 = vpop.f32.mrb[9].mxu1 }
 0x476   :  { %v899_v45 = vpop.f32.mrb[10].mxu1 }
 0x477   :  { %v900_v46 = vadd.f32 %v899_v45, %v828_v44  ;;  %v2703_v47 = vpop.f32.mrb[11].mxu1 }
 0x479   :  { %v976_v49 = vsel %vm572_vm2, %v900_v46, -inf }
 0x47a   :  { %977 = vmax.xlane.f32.xlu0 %v976_v49  ;;  %v972_v50 = vpop.f32.mrb[12].mxu1 }
 0x47b   :  { %v973_v51 = vadd.f32 %v972_v50, %v829_v48  ;;  %v2708_v52 = vpop.f32.mrb[13].mxu1 }
 0x47d   :  { %v979_v53 = vsel %vm572_vm2, %v973_v51, -inf }
 0x47e   :  { %980 = vmax.xlane.f32.xlu1 %v979_v53 }
 0x507   :  { %v978_v54 = vpop.xlane.xlu0 %977 }
 0x508   :  { %v982_v55 = vsub.f32 %v900_v46, %v978_v54 }
 0x50a   :  { %v984_v56 = vmul.f32 1.442695, %v982_v55  ;;  %v2776_v55 = vpop.f32.mrb[8].mxu0 }
 0x50b   :  { %v981_v57 = vpop.xlane.xlu1 %980 }
 0x50c   :  { %3027 = vpow2.f32 %v984_v56  ;;  %v983_v58 = vsub.f32 %v973_v51, %v981_v57  ;;  %v1640_v56 = vpop.f32.mrb[9].mxu0 }
 0x50e   :  { %v986_v59 = vmul.f32 1.442695, %v983_v58 }
 0x510   :  { %3029 = vpow2.f32 %v986_v59 }
 0x516   :  { %v3028_v60 = vpop.eup %3027 }
 0x517   :  { %v988_v61 = vsel %vm572_vm2, %v3028_v60, 0.0 }
 0x518   :  { %989 = vadd.xlane.f32.xlu0 %v988_v61 }
 0x51a   :  { %v3030_v62 = vpop.eup %3029 }
 0x51b   :  { %v991_v63 = vsel %vm572_vm2, %v3030_v62, 0.0 }
 0x51c   :  { %992 = vadd.xlane.f32.xlu1 %v991_v63 }
 0x52d   :  { %1079 = vrot.lane.b32.xlu1 %v3570_v41, %s3305_s10 }
 0x52e   :  { %1002 = vrot.lane.b32.xlu0 %v3572_v42, %s3305_s10 }
 0x5a5   :  { %v990_v2 = vpop.xlane.xlu0 %989 }
 0x5a6   :  { %3031 = vrcp.f32 %v990_v2 }
 0x5a9   :  { %v1003_v3 = vpop.permute.xlu0 %1002  ;;  %v993_v4 = vpop.xlane.xlu1 %992 }
 0x5aa   :  { %3033 = vrcp.f32 %v993_v4  ;;  %2710 = vmatpush3.msra.mxu1 %v1003_v3  ;;  %v1650_v4 = vld [vmem:[#allocation5 + $0x30] sm:$0xff] }
 0x5ab   :  { %2714 = vmatprep.subr.mxu1 %v3303_v38 }
 0x5ad   :  { %v1080_v7 = vpop.permute.xlu1 %1079 }
 0x5b0   :  { %v3032_v5 = vpop.eup %3031 }
 0x5b1   :  { %v995_v6 = vmul.f32 %v3032_v5, %v3028_v60 }
 0x5b3   :  { %999 = vst.msk [vmem:[#allocation17 + $0x10] sm:$0xff] %vm572_vm2, %v995_v6  ;;  %2712 = vmatmul.mubr.msk.f32.vlgmr.msra.gmra.mrb[14].mxu1 %vm572_vm2, %v995_v6 }
 0x5b4   :  { %v3034_v9 = vpop.eup %3033  ;;  %2715 = vmatpush3.msra.mxu1 %v1080_v7  ;;  %2716 = vmatprep.mubr.msk.f32.mxu1 %vm3304_vm1, %v3303_v38 }
 0x5b5   :  { %v997_v10 = vmul.f32 %v3034_v9, %v3030_v62  ;;  %2738 = vmatprep.subr.mxu1 %v3303_v38  ;;  %v1651_v9 = vld [vmem:[#allocation5 + $0x38] sm:$0xff] }
 0x5b7   :  { %1000 = vst.msk [vmem:[#allocation17 + $0x18] sm:$0xff] %vm572_vm2, %v997_v10  ;;  %2717 = vmatmul.mubr.msk.f32.vlgmr.msra.gmra.mrb[16].mxu1 %vm572_vm2, %v997_v10 }
 0x5b8   :  { %2740 = vmatprep.mubr.msk.f32.mxu1 %vm3304_vm1, %v3303_v38 }
 0x5bb   :  { %2739 = vmatpush3.xpose.msk.msra.mxu1 %vm170_vm0, %v3565_v40 }
 0x5bc   :  { %2743 = vmatprep.subr.mxu1 %v3303_v38 }
 0x5be   :  { %2741 = vmatmul.mubr.msk.f32.vlgmr.msra.gmra.mrb[18].mxu1 %vm170_vm0, %v1230_v1 }
 0x5bf   :  { %2744 = vmatpush3.xpose.msk.msra.mxu1 %vm170_vm0, %v3563_v39  ;;  %2745 = vmatprep.mubr.msk.f32.mxu1 %vm3304_vm1, %v3303_v38 }
 0x5c0   :  { %2748 = vmatprep.subr.mxu1 %v3303_v38 }
 0x5c2   :  { %2746 = vmatmul.mubr.msk.f32.vlgmr.msra.gmra.mrb[20].mxu1 %vm170_vm0, %v2737_v0 }
 0x5c3   :  { %2750 = vmatprep.mubr.msk.f32.mxu1 %vm3304_vm1, %v3303_v38 }
 0x686   :  { %v3653_v23 = vpop.f32.mrb[14].mxu1 }
 0x687   :  { %v2713_v24 = vpop.f32.mrb[15].mxu1 }
 0x68a   :  { %v3655_v25 = vpop.f32.mrb[16].mxu1 }
 0x68b   :  { %v2718_v26 = vpop.f32.mrb[17].mxu1 }
 0x691   :  { %v1311_v28 = vpop.f32.mrb[18].mxu1 }
 0x692   :  { %v1312_v29 = vadd.f32 %v1311_v28, %v1240_v27  ;;  %v2742_v31 = vpop.f32.mrb[19].mxu1 }
 0x693   :  { %v2008_v31 = vld [vmem:[#allocation11] sm:$0xff] }
 0x694   :  { %v1388_v33 = vsel %vm572_vm2, %v1312_v29, -inf }
 0x695   :  { %1389 = vmax.xlane.f32.xlu1 %v1388_v33  ;;  %v1384_v34 = vpop.f32.mrb[20].mxu1  ;;  %v2010_v33 = vld [vmem:[#allocation11 + $0x10] sm:$0xff] }
 0x696   :  { %v1385_v36 = vadd.f32 %v1384_v34, %v1241_v32  ;;  %v2747_v43 = vpop.f32.mrb[21].mxu1  ;;  %v2009_v32 = vld [vmem:[#allocation11 + $0x8] sm:$0xff] }
 0x697   :  { %v2950_v34 = vpack.c.bf16 %v2009_v32, %v2008_v31  ;;  %v2472_v32 = vld [vmem:[%s3775_s7] ss:$0 sm:$0xff] }
 0x698   :  { %v1391_v44 = vsel %vm572_vm2, %v1385_v36, -inf }
 0x699   :  { %1392 = vmax.xlane.f32.xlu0 %v1391_v44  ;;  %v2012_v44 = vld [vmem:[#allocation11 + $0x20] sm:$0xff]  ;;  %2951 = vmatprep.subr.bf16.mxu0 %v2950_v34 }
 0x69a   :  { %2953 = vmatpush3.bf16.msra.mxu0 %v2950_v34 }
 0x722   :  { %v1390_v45 = vpop.xlane.xlu1 %1389 }
 0x723   :  { %v1394_v46 = vsub.f32 %v1312_v29, %v1390_v45  ;;  %v2013_v45 = vld [vmem:[#allocation11 + $0x28] sm:$0xff] }
 0x725   :  { %v1396_v47 = vmul.f32 1.442695, %v1394_v46  ;;  %v2958_v46 = vpack.c.bf16 %v2013_v45, %v2012_v44 }
 0x726   :  { %v1393_v48 = vpop.xlane.xlu0 %1392 }
 0x727   :  { %3035 = vpow2.f32 %v1396_v47  ;;  %v1395_v49 = vsub.f32 %v1385_v36, %v1393_v48  ;;  %v2011_v36 = vld [vmem:[#allocation11 + $0x18] sm:$0xff] }
 0x728   :  { %v2954_v43 = vpack.c.bf16 %v2011_v36, %v2010_v33  ;;  %v2015_v47 = vld [vmem:[#allocation11 + $0x38] sm:$0xff] }
 0x729   :  { %v1398_v50 = vmul.f32 1.442695, %v1395_v49 }
 0x72a   :  { %2955 = vmatprep.subr.bf16.mxu0 %v2954_v43 }
 0x72b   :  { %3037 = vpow2.f32 %v1398_v50  ;;  %2957 = vmatpush3.bf16.msra.mxu0 %v2954_v43 }
 0x72c   :  { %2959 = vmatprep.subr.bf16.mxu0 %v2958_v46 }
 0x72f   :  { %2961 = vmatpush3.bf16.msra.mxu0 %v2958_v46  ;;  %v2252_v46 = vld [vmem:[#allocation14] sm:$0xff] }
 0x731   :  { %v3036_v51 = vpop.eup %3035 }
 0x732   :  { %v1400_v52 = vsel %vm572_vm2, %v3036_v51, 0.0 }
 0x733   :  { %1401 = vadd.xlane.f32.xlu0 %v1400_v52 }
 0x735   :  { %v3038_v53 = vpop.eup %3037 }
 0x736   :  { %v1403_v54 = vsel %vm572_vm2, %v3038_v53, 0.0 }
 0x737   :  { %1404 = vadd.xlane.f32.xlu1 %v1403_v54 }
 0x748   :  { %1489 = vrot.lane.b32.xlu1 %v3570_v41, %s3306_s24 }
 0x749   :  { %1413 = vrot.lane.b32.xlu0 %v3572_v42, %s3306_s24 }
 0x7c0   :  { %v1402_v57 = vpop.xlane.xlu0 %1401 }
 0x7c1   :  { %3039 = vrcp.f32 %v1402_v57 }
 0x7c4   :  { %v1405_v58 = vpop.xlane.xlu1 %1404  ;;  %v1414_v59 = vpop.permute.xlu0 %1413 }
 0x7c5   :  { %3041 = vrcp.f32 %v1405_v58  ;;  %2749 = vmatpush3.msra.mxu1 %v1414_v59 }
 0x7c6   :  { %2753 = vmatprep.subr.mxu1 %v3303_v38 }
 0x7c8   :  { %v1490_v62 = vpop.permute.xlu1 %1489 }
 0x7cb   :  { %v3040_v60 = vpop.eup %3039 }
 0x7cc   :  { %v1407_v61 = vmul.f32 %v3040_v60, %v3036_v51 }
 0x7ce   :  { %1411 = vst.msk [vmem:[#allocation17 + $0x20] sm:$0xff] %vm572_vm2, %v1407_v61  ;;  %2751 = vmatmul.mubr.msk.f32.vlgmr.msra.gmra.mrb[22].mxu1 %vm572_vm2, %v1407_v61 }
 0x7cf   :  { %v3042_v63 = vpop.eup %3041  ;;  %2754 = vmatpush3.msra.mxu1 %v1490_v62  ;;  %2755 = vmatprep.mubr.msk.f32.mxu1 %vm3304_vm1, %v3303_v38 }
 0x7d0   :  { %v1409_v0 = vmul.f32 %v3042_v63, %v3038_v53  ;;  %2777 = vmatprep.subr.mxu1 %v3303_v38 }
 0x7d2   :  { %1412 = vst.msk [vmem:[#allocation17 + $0x28] sm:$0xff] %vm572_vm2, %v1409_v0  ;;  %2756 = vmatmul.mubr.msk.f32.vlgmr.msra.gmra.mrb[24].mxu1 %vm572_vm2, %v1409_v0 }
 0x7d3   :  { %2779 = vmatprep.mubr.msk.f32.mxu1 %vm3304_vm1, %v3303_v38 }
 0x7d6   :  { %2778 = vmatpush3.xpose.msk.msra.mxu1 %vm170_vm0, %v3565_v40 }
 0x7d7   :  { %2782 = vmatprep.subr.mxu1 %v3303_v38 }
 0x7d9   :  { %2780 = vmatmul.mubr.msk.f32.vlgmr.msra.gmra.mrb[26].mxu1 %vm170_vm0, %v1640_v56 }
 0x7da   :  { %2783 = vmatpush3.xpose.msk.msra.mxu1 %vm170_vm0, %v3563_v39  ;;  %2784 = vmatprep.mubr.msk.f32.mxu1 %vm3304_vm1, %v3303_v38 }
 0x7db   :  { %2787 = vmatprep.subr.mxu1 %v3303_v38 }
 0x7dd   :  { %2785 = vmatmul.mubr.msk.f32.vlgmr.msra.gmra.mrb[28].mxu1 %vm170_vm0, %v2776_v55 }
 0x7de   :  { %2789 = vmatprep.mubr.msk.f32.mxu1 %vm3304_vm1, %v3303_v38 }
 0x8a1   :  { %v1485_v1 = vpop.f32.mrb[22].mxu1 }
 0x8a2   :  { %v2752_v2 = vpop.f32.mrb[23].mxu1 }
 0x8a5   :  { %v1561_v40 = vpop.f32.mrb[24].mxu1 }
 0x8a6   :  { %v2757_v3 = vpop.f32.mrb[25].mxu1 }
 0x8ac   :  { %v1721_v5 = vpop.f32.mrb[26].mxu1 }
 0x8ad   :  { %v1722_v6 = vadd.f32 %v1721_v5, %v1650_v4  ;;  %v2781_v7 = vpop.f32.mrb[27].mxu1 }
 0x8af   :  { %v1798_v39 = vsel %vm572_vm2, %v1722_v6, -inf }
 0x8b0   :  { %1799 = vmax.xlane.f32.xlu1 %v1798_v39  ;;  %v1794_v10 = vpop.f32.mrb[28].mxu1 }
 0x8b1   :  { %v1795_v11 = vadd.f32 %v1794_v10, %v1651_v9  ;;  %v2786_v12 = vpop.f32.mrb[29].mxu1 }
 0x8b3   :  { %v1801_v13 = vsel %vm572_vm2, %v1795_v11, -inf }
 0x8b4   :  { %1802 = vmax.xlane.f32.xlu0 %v1801_v13  ;;  %v2145_v13 = vld [vmem:[#allocation13 + $0x8] sm:$0xff] }
 0x93d   :  { %v1800_v14 = vpop.xlane.xlu1 %1799 }
 0x93e   :  { %v1804_v15 = vsub.f32 %v1722_v6, %v1800_v14 }
 0x940   :  { %v1806_v16 = vmul.f32 1.442695, %v1804_v15  ;;  %v2146_v15 = vld [vmem:[#allocation13 + $0x10] sm:$0xff] }
 0x941   :  { %v1803_v17 = vpop.xlane.xlu0 %1802 }
 0x942   :  { %3043 = vpow2.f32 %v1806_v16  ;;  %v1805_v18 = vsub.f32 %v1795_v11, %v1803_v17  ;;  %v2147_v16 = vld [vmem:[#allocation13 + $0x18] sm:$0xff] }
 0x943   :  { %v2970_v17 = vpack.c.bf16 %v2147_v16, %v2146_v15 }
 0x944   :  { %v1808_v19 = vmul.f32 1.442695, %v1805_v18  ;;  %v2148_v18 = vld [vmem:[#allocation13 + $0x20] sm:$0xff] }
 0x946   :  { %3045 = vpow2.f32 %v1808_v19  ;;  %v2149_v19 = vld [vmem:[#allocation13 + $0x28] sm:$0xff] }
 0x94c   :  { %v3044_v20 = vpop.eup %3043 }
 0x94d   :  { %v1810_v21 = vsel %vm572_vm2, %v3044_v20, 0.0 }
 0x94e   :  { %1811 = vadd.xlane.f32.xlu0 %v1810_v21  ;;  %v2150_v21 = vld [vmem:[#allocation13 + $0x30] sm:$0xff] }
 0x950   :  { %v3046_v22 = vpop.eup %3045 }
 0x951   :  { %v1813_v24 = vsel %vm572_vm2, %v3046_v22, 0.0 }
 0x952   :  { %1814 = vadd.xlane.f32.xlu1 %v1813_v24 }
 0x963   :  { %1899 = vrot.lane.b32.xlu1 %v3570_v41, %s3307_s20 }
 0x964   :  { %1823 = vrot.lane.b32.xlu0 %v3572_v42, %s3307_s20 }
 0x967   :  { %1977 = vrot.lane.b32.xlu1 %v3653_v23, %s3308_s25 }
 0x968   :  { %1985 = vrot.lane.b32.xlu0 %v1485_v1, %s3309_s26 }
 0x96b   :  { %1979 = vrot.lane.b32.xlu1 %v3655_v25, %s3308_s25 }
 0x96f   :  { %1987 = vrot.lane.b32.xlu1 %v1561_v40, %s3309_s26 }
 0x9db   :  { %v1812_v26 = vpop.xlane.xlu0 %1811 }
 0x9dc   :  { %3047 = vrcp.f32 %v1812_v26 }
 0x9df   :  { %v1815_v27 = vpop.xlane.xlu1 %1814  ;;  %v1824_v28 = vpop.permute.xlu0 %1823 }
 0x9e0   :  { %3049 = vrcp.f32 %v1815_v27  ;;  %2788 = vmatpush3.msra.mxu1 %v1824_v28 }
 0x9e1   :  { %2792 = vmatprep.subr.mxu1 %v3303_v38 }
 0x9e3   :  { %v1900_v42 = vpop.permute.xlu1 %1899  ;;  %v1986_v55 = vpop.permute.xlu0 %1985 }
 0x9e6   :  { %v3048_v29 = vpop.eup %3047 }
 0x9e7   :  { %v1817_v41 = vmul.f32 %v3048_v29, %v3044_v20  ;;  %v1978_v53 = vpop.permute.xlu1 %1977  ;;  %v2974_v20 = vpack.c.bf16 %v2149_v19, %v2148_v18 }
 0x9e8   :  { %v2000_v56 = vsel %vm1999_vm3, %v3619_v35, %v1978_v53 }
 0x9e9   :  { %1821 = vst.msk [vmem:[#allocation17 + $0x30] sm:$0xff] %vm572_vm2, %v1817_v41  ;;  %2790 = vmatmul.mubr.msk.f32.vlgmr.msra.gmra.mrb[30].mxu1 %vm572_vm2, %v1817_v41  ;;  %v2003_v58 = vsel %vm2002_vm4, %v2000_v56, %v1986_v55  ;;  %v2259_v55 = vld [vmem:[#allocation14 + $0x38] sm:$0xff] }
 0x9ea   :  { %v3050_v23 = vpop.eup %3049  ;;  %2793 = vmatpush3.msra.mxu1 %v1900_v42  ;;  %2794 = vmatprep.mubr.msk.f32.mxu1 %vm3304_vm1, %v3303_v38  ;;  %v2014_v38 = vld [vmem:[#allocation11 + $0x30] sm:$0xff] }
 0x9eb   :  { %v1819_v25 = vmul.f32 %v3050_v23, %v3046_v22  ;;  %v2962_v48 = vpack.c.bf16 %v2015_v47, %v2014_v38  ;;  %v1980_v54 = vpop.permute.xlu1 %1979  ;;  %v2151_v22 = vld [vmem:[#allocation13 + $0x38] sm:$0xff]  ;;  %v2253_v38 = vld [vmem:[#allocation14 + $0x8] sm:$0xff]  ;;  %v2254_v47 = vld [vmem:[#allocation14 + $0x10] sm:$0xff] }
 0x9ec   :  { %v2001_v61 = vsel %vm1999_vm3, %v3621_v37, %v1980_v54  ;;  %v2978_v24 = vpack.c.bf16 %v2151_v22, %v2150_v21  ;;  %v2258_v54 = vld [vmem:[#allocation14 + $0x30] sm:$0xff] }
 0x9ed   :  { %1822 = vst.msk [vmem:[#allocation17 + $0x38] sm:$0xff] %vm572_vm2, %v1819_v25  ;;  %2795 = vmatmul.mubr.msk.f32.vlgmr.msra.gmra.mrb[32].mxu1 %vm572_vm2, %v1819_v25  ;;  %2963 = vmatprep.subr.bf16.mxu0 %v2962_v48  ;;  %v2471_v25 = vld [vmem:[%s3774_s6] ss:$0 sm:$0xff]  ;;  %v2994_v56 = vpack.c.bf16 %v2259_v55, %v2258_v54 }
 0x9ee   :  { %2965 = vmatpush3.bf16.msra.mxu0 %v2962_v48  ;;  %v2982_v48 = vpack.c.bf16 %v2253_v38, %v2252_v46 }
 0x9ef   :  { %v1988_v57 = vpop.permute.xlu1 %1987 }
 0x9f0   :  { %v2004_v62 = vsel %vm2002_vm4, %v2001_v61, %v1988_v57  ;;  %2983 = vmatprep.subr.bf16.mxu0 %v2982_v48  ;;  %v2473_v57 = vld [vmem:[%s3777_s9] ss:$0 sm:$0xff]  ;;  %s3312_s9 = smov [#allocation17]  }
 0xabc   :  { %v1895_v49 = vpop.f32.mrb[30].mxu1 }
 0xabd   :  { %1993 = vrot.lane.b32.xlu0 %v1895_v49, %s3310_s5  ;;  %v2791_v50 = vpop.f32.mrb[31].mxu1  ;;  %v2255_v49 = vld [vmem:[#allocation14 + $0x18] sm:$0xff] }
 0xabe   :  { %v2986_v50 = vpack.c.bf16 %v2255_v49, %v2254_v47 }
 0xac0   :  { %v1971_v51 = vpop.f32.mrb[32].mxu1 }
 0xac1   :  { %1995 = vrot.lane.b32.xlu1 %v1971_v51, %s3310_s5  ;;  %v2796_v52 = vpop.f32.mrb[33].mxu1  ;;  %v2256_v51 = vld [vmem:[#allocation14 + $0x20] sm:$0xff] }
 0xac2   :  { %v2257_v52 = vld [vmem:[#allocation14 + $0x28] sm:$0xff] }
 0xac3   :  { %v2990_v53 = vpack.c.bf16 %v2257_v52, %v2256_v51 }
 0xb2f   :  { %v1994_v59 = vpop.permute.xlu0 %1993 }
 0xb30   :  { %v2006_v60 = vsel %vm2005_vm5, %v2003_v58, %v1994_v59 }
 0xb31   :  { %2813 = vmatprep.mubr.msk.f32.mxu0 %vm170_vm0, %v2006_v60 }
 0xb33   :  { %v1996_v63 = vpop.permute.xlu1 %1995 }
 0xb34   :  { %v2007_v0 = vsel %vm2005_vm5, %v2004_v62, %v1996_v63 }
 0xb35   :  { %2814 = vmatmul.mubr.msk.f32.vlgmr.msra.gmra.mrb[10].mxu0 %vm170_vm0, %v2007_v0 }
 0xb36   :  { %2985 = vmatpush3.bf16.msra.mxu0 %v2982_v48 }
 0xb37   :  { %2987 = vmatprep.subr.bf16.mxu0 %v2986_v50 }
 0xb3a   :  { %2989 = vmatpush3.bf16.msra.mxu0 %v2986_v50 }
 0xb3b   :  { %2991 = vmatprep.subr.bf16.mxu0 %v2990_v53 }
 0xb3e   :  { %2993 = vmatpush3.bf16.msra.mxu0 %v2990_v53 }
 0xb3f   :  { %2995 = vmatprep.subr.bf16.mxu0 %v2994_v56 }
 0xb42   :  { %2997 = vmatpush3.bf16.msra.mxu0 %v2994_v56 }
 0xc08   :  { %v2815_v1 = vpop.f32.mrb[10].mxu0 }
 0xc09   :  { %v2098_v2 = vadd.f32 %v2815_v1, %v3548_v30  ;;  %v2088_v40 = vpop.f32.mrb[11].mxu0 }
 0xc0a   :  { %v2097_v35 = vadd.f32 %v2088_v40, %v3542_v8  ;;  %v2144_v8 = vld [vmem:[#allocation13] sm:$0xff] }
 0xc0b   :  { %v2102_v3 = vsel %vm170_vm0, %v2098_v2, 0.0  ;;  %v2966_v14 = vpack.c.bf16 %v2145_v13, %v2144_v8 }
 0xc0c   :  { %2103 = vadd.xlane.f32.xlu1 %v2102_v3  ;;  %v2099_v4 = vsel %vm170_vm0, %v2097_v35, 0.0 }
 0xc0d   :  { %2100 = vadd.xlane.f32.xlu0 %v2099_v4  ;;  %2967 = vmatprep.subr.bf16.mxu1 %v2966_v14 }
 0xc0e   :  { %2969 = vmatpush3.bf16.msra.mxu1 %v2966_v14 }
 0xc0f   :  { %2971 = vmatprep.subr.bf16.mxu1 %v2970_v17 }
 0xc12   :  { %2973 = vmatpush3.bf16.msra.mxu1 %v2970_v17 }
 0xc13   :  { %2975 = vmatprep.subr.bf16.mxu1 %v2974_v20 }
 0xc16   :  { %2977 = vmatpush3.bf16.msra.mxu1 %v2974_v20 }
 0xc17   :  { %2979 = vmatprep.subr.bf16.mxu1 %v2978_v24 }
 0xc1a   :  { %2981 = vmatpush3.bf16.msra.mxu1 %v2978_v24 }
 0xc99   :  { %v2104_v5 = vpop.xlane.xlu1 %2103 }
 0xc9a   :  { %v2107_v6 = vmul.f32 0.015625, %v2104_v5  ;;  %v2101_v37 = vpop.xlane.xlu0 %2100 }
 0xc9b   :  { %v2106_v7 = vmul.f32 0.015625, %v2101_v37 }
 0xc9c   :  { %v2109_v9 = vsub.f32 %v2098_v2, %v2107_v6 }
 0xc9d   :  { %v2108_v39 = vsub.f32 %v2097_v35, %v2106_v7  ;;  %v2476_v35 = vld [vmem:[%s3779_s11] ss:$0 sm:$0xff]  ;;  %s2413_s11 = sshll.u32 %s3312_s9, 4  ;;  %s2414_s11 = int_to_ptr.vmem [resolvable:$true] %s2413_s11 }
 0xc9e   :  { %v2111_v12 = vmul.f32 %v2109_v9, %v2109_v9  ;;  %s3235_s29 = scalar_lea.vmem %s2414_s11, 1024  ;;  %p3240_p9 = scmp.lt.s32.totalorder %s2414_s11, %s2414_s11 }
 0xc9f   :  { %v2110_v10 = vmul.f32 %v2108_v39, %v2108_v39  ;;  %p3236_p8 = scmp.ne.s32.totalorder %s2414_s11, %s3235_s29  ;;  %p3241_p10 = scmp.lt.s32.totalorder %s3235_s29, %s3235_s29 }
 0xca0   :  { %v2115_v30 = vsel %vm170_vm0, %v2111_v12, 0.0 }
 0xca1   :  { %v2112_v11 = vsel %vm170_vm0, %v2110_v10, 0.0  ;;  %p3242_p11 = por %p3241_p10, %p3240_p9 }
 0xca2   :  { %2113 = vadd.xlane.f32.xlu0 %v2112_v11 }
 0xca3   :  { %p3243_p12 = pnand %p3242_p11, %p3236_p8 }
 0xca6   :  { %2116 = vadd.xlane.f32.xlu0 %v2115_v30 }
 0xd2f   :  { %v2114_v26 = vpop.xlane.xlu0 %2113 }
 0xd30   :  { %v2118_v27 = vmul.f32 0.015625, %v2114_v26 }
 0xd32   :  { %v2120_v28 = vadd.f32 1e-05, %v2118_v27 }
 0xd33   :  { %v2117_v29 = vpop.xlane.xlu0 %2116 }
 0xd34   :  { %3051 = vrsqrt.f32 %v2120_v28  ;;  %v2119_v41 = vmul.f32 0.015625, %v2117_v29 }
 0xd36   :  { %v2121_v42 = vadd.f32 1e-05, %v2119_v41 }
 0xd38   :  { %3053 = vrsqrt.f32 %v2121_v42 }
 0xd3e   :  { %v3052_v23 = vpop.eup %3051 }
 0xd3f   :  { %v2124_v31 = vmul.f32 %v3052_v23, %v2108_v39 }
 0xd41   :  { %v2133_v33 = vmul.f32 %v2471_v25, %v2124_v31 }
 0xd42   :  { %v3054_v34 = vpop.eup %3053 }
 0xd43   :  { %v2125_v36 = vmul.f32 %v3054_v34, %v2109_v9  ;;  %v2142_v43 = vadd.f32 %v2472_v32, %v2133_v33 }
 0xd45   :  { %v2134_v44 = vmul.f32 %v2471_v25, %v2125_v36  ;;  %2832 = vmatprep.mubr.msk.f32.mxu1 %vm170_vm0, %v2142_v43 }
 0xd47   :  { %v2143_v45 = vadd.f32 %v2472_v32, %v2134_v44 }
 0xd49   :  { %2833 = vmatmul.mubr.msk.f32.vlgmr.msra.gmra.mrb[34].mxu1 %vm170_vm0, %v2143_v45 }
 0xe1c   :  { %v2834_v58 = vpop.f32.mrb[34].mxu1 }
 0xe1d   :  { %v2237_v59 = vadd.f32 %v2834_v58, %v2473_v57  ;;  %v2231_v60 = vpop.f32.mrb[35].mxu1 }
 0xe1e   :  { %v2232_v61 = vadd.f32 %v2473_v57, %v2231_v60 }
 0xe1f   :  { %v2241_v62 = vmax.f32 %v2237_v59, 0.0 }
 0xe20   :  { %v2240_v63 = vmax.f32 %v2232_v61, 0.0 }
 0xe21   :  { %2246 = vrot.lane.b32.xlu1 %v2241_v62, %s3311_s3 }
 0xe22   :  { %2244 = vrot.lane.b32.xlu0 %v2240_v63, %s3311_s3 }
 0xe93   :  { %v2247_v0 = vpop.permute.xlu1 %2246 }
 0xe94   :  { %v2245_v1 = vpop.permute.xlu0 %2244  ;;  %v2251_v40 = vmul.f32 %v2247_v0, %v2237_v59 }
 0xe95   :  { %v2250_v2 = vmul.f32 %v2245_v1, %v2232_v61 }
 0xe97   :  { %2851 = vmatprep.mubr.msk.f32.mxu0 %vm170_vm0, %v2250_v2 }
 0xe98   :  { %2852 = vmatmul.mubr.msk.f32.vlgmr.msra.gmra.mrb[12].mxu0 %vm170_vm0, %v2251_v40 }
 0xf6b   :  { %v2853_v3 = vpop.f32.mrb[12].mxu0 }
 0xf6c   :  { %v2345_v4 = vadd.f32 %v2853_v3, %v2476_v35  ;;  %v2339_v5 = vpop.f32.mrb[13].mxu0 }
 0xf6d   :  { %v2340_v6 = vadd.f32 %v2476_v35, %v2339_v5 }
 0xf6e   :  { %v2349_v37 = vadd.f32 %v2345_v4, %v2143_v45 }
 0xf6f   :  { %v2348_v7 = vadd.f32 %v2340_v6, %v2142_v43 }
 0xf70   :  { %v2353_v9 = vsel %vm170_vm0, %v2349_v37, 0.0 }
 0xf71   :  { %2354 = vadd.xlane.f32.xlu0 %v2353_v9  ;;  %v2350_v39 = vsel %vm170_vm0, %v2348_v7, 0.0 }
 0xf72   :  { %2351 = vadd.xlane.f32.xlu1 %v2350_v39 }
 0xffe   :  { %v2355_v10 = vpop.xlane.xlu0 %2354 }
 0xfff   :  { %v2357_v11 = vmul.f32 0.015625, %v2355_v10  ;;  %v2352_v12 = vpop.xlane.xlu1 %2351 }
0x1000   :  { %v2356_v30 = vmul.f32 0.015625, %v2352_v12 }
0x1001   :  { %v2359_v8 = vsub.f32 %v2349_v37, %v2357_v11 }
0x1002   :  { %v2358_v13 = vsub.f32 %v2348_v7, %v2356_v30 }
0x1003   :  { %v2361_v14 = vmul.f32 %v2359_v8, %v2359_v8 }
0x1004   :  { %v2360_v15 = vmul.f32 %v2358_v13, %v2358_v13 }
0x1005   :  { %v2365_v16 = vsel %vm170_vm0, %v2361_v14, 0.0 }
0x1006   :  { %2366 = vadd.xlane.f32.xlu1 %v2365_v16  ;;  %v2362_v17 = vsel %vm170_vm0, %v2360_v15, 0.0 }
0x1007   :  { %2363 = vadd.xlane.f32.xlu0 %v2362_v17 }
0x1008   :  { %3246 = shalt.err (!%p3243_p12)
}
0x1009   :  { %s3247_s18 = scalar_lea.hbm %s3783_s15, 1024 }
0x100a   :  { %p3248_p13 = scmp.ne.s32.totalorder %s3783_s15, %s3247_s18  ;;  %p3251_p0 = scmp.lt.u32.totalorder %s3247_s18, %s3783_s15 }
0x100c   :  { %p3253_p1 = pnand %p3251_p0, %p3248_p13 }
0x100e   :  { %3256 = shalt.err (!%p3253_p1)
}
0x100f   :  { %2419 = dma.vmem_to_hbm [thread:$0]  %s2414_s11, 1024, %s3783_s15, [#allocation18], %s3295_s30, %s3295_s30, %s3296_s16  }
0x1010   :  { %v2479_v27 = vld [vmem:[%s3780_s12] ss:$0 sm:$0xff]  ;;  %s3313_s15 = smov [#allocation16]  }
0x1011   :  { %v2480_v42 = vld [vmem:[%s3781_s13] ss:$0 sm:$0xff]  ;;  %s2401_s17 = sshll.u32 %s3313_s15, 4  ;;  %s2402_s17 = int_to_ptr.vmem [resolvable:$true] %s2401_s17 }
0x1012   :  { %s3257_s27 = scalar_lea.vmem %s2402_s17, 256  ;;  %p3262_p3 = scmp.lt.s32.totalorder %s2402_s17, %s2402_s17 }
0x1013   :  { %p3258_p2 = scmp.ne.s32.totalorder %s2402_s17, %s3257_s27  ;;  %p3263_p4 = scmp.lt.s32.totalorder %s3257_s27, %s3257_s27 }
0x1015   :  { %p3264_p5 = por %p3263_p4, %p3262_p3 }
0x1017   :  { %p3265_p6 = pnand %p3264_p5, %p3258_p2 }
0x1093   :  { %v2367_v18 = vpop.xlane.xlu1 %2366 }
0x1094   :  { %v2369_v19 = vmul.f32 0.015625, %v2367_v18  ;;  %v2364_v20 = vpop.xlane.xlu0 %2363 }
0x1095   :  { %v2368_v21 = vmul.f32 0.015625, %v2364_v20 }
0x1096   :  { %v2371_v22 = vadd.f32 1e-05, %v2369_v19 }
0x1097   :  { %v2370_v24 = vadd.f32 1e-05, %v2368_v21 }
0x1098   :  { %3055 = vrsqrt.f32 %v2371_v22 }
0x1099   :  { %3057 = vrsqrt.f32 %v2370_v24 }
0x10a2   :  { %v3056_v26 = vpop.eup %3055 }
0x10a3   :  { %v3058_v28 = vpop.eup %3057  ;;  %v2375_v29 = vmul.f32 %v3056_v26, %v2359_v8 }
0x10a4   :  { %v2374_v41 = vmul.f32 %v3058_v28, %v2358_v13 }
0x10a5   :  { %v2384_v23 = vmul.f32 %v2479_v27, %v2375_v29 }
0x10a6   :  { %v2383_v25 = vmul.f32 %v2479_v27, %v2374_v41 }
0x10a7   :  { %v2393_v31 = vadd.f32 %v2480_v42, %v2384_v23 }
0x10a8   :  { %v2392_v32 = vadd.f32 %v2480_v42, %v2383_v25 }
0x10a9   :  { %2395 = vst.msk [vmem:[#allocation16 + $0x8] sm:$0xff] %vm170_vm0, %v2393_v31 }
0x10aa   :  { %2394 = vst.msk [vmem:[#allocation16] sm:$0xff] %vm170_vm0, %v2392_v32 }
0x10ab   :  { %3268 = shalt.err (!%p3265_p6)
}
0x10ac   :  { %s3269_s4 = scalar_lea.hbm %s3782_s14, 256 }
0x10ad   :  { %p3270_p7 = scmp.ne.s32.totalorder %s3782_s14, %s3269_s4  ;;  %p3273_p8 = scmp.lt.u32.totalorder %s3269_s4, %s3782_s14 }
0x10af   :  { %p3275_p9 = pnand %p3273_p8, %p3270_p7 }
0x10b1   :  { %3278 = shalt.err (!%p3275_p9)
}
0x10b2   :  { %2407 = dma.vmem_to_hbm [thread:$0]  %s2402_s17, 256, %s3782_s14, [#allocation4], %s3295_s30, %s3295_s30, %s3296_s16  }
0x10b3   :  { %3289 = dma.done.wait [#allocation4], 256  }
0x10b4   :  { %3290 = vsyncadd [#allocation4], 4294967040 }
0x10b5   :  { %3291 = dma.done.wait [#allocation18], 1024  }
0x10b6   :  { %3292 = vsyncadd [#allocation18], 4294966272 }
0x10b7   :  { %2426 = vsyncpa [#allocation3], 1 }
0x10b8   :  { %2427 = vsyncpa [#allocation6], 1 }
0x10b9   :  { %2428 = vsyncpa [#allocation9], 1 }
0x10ba   :  { %2429 = vsyncpa [#allocation12], 1 }
0x10bb   :  { %2430 = vsyncpa [#allocation15], 1 }
0x10bc   :  { %2431 = vsyncpa [#allocation4], 1 }
0x10bd   :  { %2432 = vsyncpa [#allocation18], 1 }

</bundles_post_ra>
